<compile_context>
chip_gen: v7x
topology: tpu7x:2x2x1
jax: 0.10.0
libtpu: 0.0.40
codegen_flags: <defaults>
</compile_context>

<pallas_src>
import jax
import jax.numpy as jnp
from jax.experimental import pallas as pl
from jax.experimental.pallas import tpu as pltpu  # noqa: F401  (kept for TPU-specific tuning hooks)

# ---------------- scaled-down ViT-tiny-like config -------------------------
IMG = 16          # image size
PATCH = 8         # patch size
C_IN = 3          # channels
D_MODEL = 32      # hidden size
N_HEADS = 2       # attention heads
HEAD_DIM = D_MODEL // N_HEADS
D_MLP = 64        # intermediate size
N_LAYERS = 2      # encoder layers
N_PATCH = (IMG // PATCH) ** 2
SEQ = N_PATCH + 1                    # + CLS token
K_PATCH = C_IN * PATCH * PATCH       # flattened patch length
LN_EPS = 1e-12                       # HF ViT layer_norm_eps
NEG_INF = -1e30


def _ln(x, g, b, eps=LN_EPS):
    mu = jnp.mean(x, axis=-1, keepdims=True)
    var = jnp.mean((x - mu) ** 2, axis=-1, keepdims=True)
    return (x - mu) * jax.lax.rsqrt(var + eps) * g + b


# ---------------------------- fused kernel ----------------------------------
def vit_fused_kernel(
    patches_ref,    # (B*SEQ, K)      zero rows at the CLS positions
    emb_add_ref,    # (B*SEQ, D)      cls+pos[0] rows / b_pe+pos[1:] rows
    attn_bias_ref,  # (B*SEQ, B*SEQ)  0 within a batch element, -1e30 across
    pool_ref,       # (B, B*SEQ)      1/SEQ within a batch element, 0 across
    w_pe_ref,       # (K, D)          patch-embedding projection
    ln_ref,         # (L, 4, D)       [ln1_gamma, ln1_beta, ln2_gamma, ln2_beta]
    wqkv_ref,       # (L, 3*H, D, hd) [q heads (pre-scaled), k heads, v heads]
    bqkv_ref,       # (L, 3*H, hd)
    wo_ref,         # (L, H, hd, D)
    bd_ref,         # (L, 2, D)       [attn-out bias bo, mlp-out bias b2]
    w1_ref,         # (L, D, F)
    b1_ref,         # (L, 1, F)
    w2_ref,         # (L, F, D)
    out_ref,        # (B, D)
):
    f32 = jnp.float32

    # ---- patch embedding + CLS + positional embedding (whole batch at once) --
    # CLS rows of `patches` are zero, so their matmul contribution is zero and
    # emb_add carries (cls + pos[0]) for them; patch rows carry (b_pe + pos[i]).
    x = (jnp.dot(patches_ref[...], w_pe_ref[...], preferred_element_type=f32)
         + emb_add_ref[...])                                    # (B*S, D)
    attn_bias = attn_bias_ref[...]

    for l in range(N_LAYERS):
        # ---------------- attention block (pre-LN) ------------------------
        h = _ln(x, ln_ref[l, 0:1], ln_ref[l, 1:2])              # layernorm_before
        attn = jnp.zeros_like(x) + bd_ref[l, 0:1]               # bo added exactly once
        for hh in range(N_HEADS):
            # 1/sqrt(head_dim) is folded into the Wq slice at init time.
            q = (jnp.dot(h, wqkv_ref[l, hh], preferred_element_type=f32)
                 + bqkv_ref[l, hh:hh + 1])
            k = (jnp.dot(h, wqkv_ref[l, N_HEADS + hh], preferred_element_type=f32)
                 + bqkv_ref[l, N_HEADS + hh:N_HEADS + hh + 1])
            v = (jnp.dot(h, wqkv_ref[l, 2 * N_HEADS + hh], preferred_element_type=f32)
                 + bqkv_ref[l, 2 * N_HEADS + hh:2 * N_HEADS + hh + 1])
            # scores across the whole (B*S) token block; cross-batch pairs are
            # pushed to -inf by the block-diagonal additive bias.
            s = jax.lax.dot_general(q, k, (((1,), (1,)), ((), ())),
                                    preferred_element_type=f32) + attn_bias
            m = jnp.max(s, axis=-1, keepdims=True)
            e = jnp.exp(s - m)
            p = e * pl.reciprocal(jnp.sum(e, axis=-1, keepdims=True), approx=True)
            o = jnp.dot(p, v, preferred_element_type=f32)        # (B*S, hd)
            attn = attn + jnp.dot(o, wo_ref[l, hh], preferred_element_type=f32)
        x = x + attn                                             # residual 1

        # ---------------- MLP block ----------------------------------------
        h2 = _ln(x, ln_ref[l, 2:3], ln_ref[l, 3:4])              # layernorm_after
        f = jnp.dot(h2, w1_ref[l], preferred_element_type=f32) + b1_ref[l]
        # TODO(synk): HF ViT uses exact (erf) GELU; tanh approximation used for
        # Mosaic-safe lowering.
        f = jax.nn.gelu(f, approximate=True)
        f = jnp.dot(f, w2_ref[l], preferred_element_type=f32) + bd_ref[l, 1:2]
        x = x + f                                                # residual 2

    # ---- mean over the sequence dim per batch element (pooling matmul) ------
    out_ref[...] = jnp.dot(pool_ref[...], x, preferred_element_type=f32)


# ---------------------------- parameters ------------------------------------
def init_params(key):
    keys = iter(jax.random.split(key, 16))
    std = 0.02

    def nrm(shape):
        return std * jax.random.normal(next(keys), shape, jnp.float32)

    scale = float(HEAD_DIM) ** -0.5
    wq = nrm((N_LAYERS, N_HEADS, D_MODEL, HEAD_DIM)) * scale   # scale folded into Wq
    wk = nrm((N_LAYERS, N_HEADS, D_MODEL, HEAD_DIM))
    wv = nrm((N_LAYERS, N_HEADS, D_MODEL, HEAD_DIM))
    ln_one = jnp.ones((N_LAYERS, 1, D_MODEL), jnp.float32)
    ln_zero = jnp.zeros((N_LAYERS, 1, D_MODEL), jnp.float32)

    return {
        "w_pe": nrm((K_PATCH, D_MODEL)),   # conv weight (D,C,P,P) flattened & transposed
        "b_pe": jnp.zeros((1, D_MODEL), jnp.float32),
        "cls": nrm((1, 1, D_MODEL)),
        "pos": nrm((1, SEQ, D_MODEL)),
        # consolidated / layer-stacked encoder params:
        "ln": jnp.concatenate([ln_one, ln_zero, ln_one, ln_zero], axis=1),  # (L,4,D)
        "wqkv": jnp.concatenate([wq, wk, wv], axis=1),                      # (L,3H,D,hd)
        "bqkv": jnp.zeros((N_LAYERS, 3 * N_HEADS, HEAD_DIM), jnp.float32),  # q-bias would also carry `scale`
        "wo": nrm((N_LAYERS, N_HEADS, HEAD_DIM, D_MODEL)),                  # per-head out proj
        "bd": jnp.zeros((N_LAYERS, 2, D_MODEL), jnp.float32),               # [bo, b2]
        "w1": nrm((N_LAYERS, D_MODEL, D_MLP)),
        "b1": jnp.zeros((N_LAYERS, 1, D_MLP), jnp.float32),
        "w2": nrm((N_LAYERS, D_MLP, D_MODEL)),
    }


# ---------------------------- forward ----------------------------------------
def vit_backbone_forward(x_nchw, params):
    B = x_nchw.shape[0]
    P = PATCH
    N_TOK = B * SEQ

    # non-overlapping patches, row-major over (h_patch, w_patch), channel-first
    # flattening to match torch Conv2d weight layout (C, P, P).
    patches = (
        x_nchw.reshape(B, C_IN, IMG // P, P, IMG // P, P)
        .transpose(0, 2, 4, 1, 3, 5)
        .reshape(B, N_PATCH, K_PATCH)
    )
    # insert zero rows where the CLS token sits -> (B*SEQ, K)
    patches_full = jnp.concatenate(
        [jnp.zeros((B, 1, K_PATCH), jnp.float32), patches], axis=1
    ).reshape(N_TOK, K_PATCH)

    # per-row additive embedding: CLS rows get cls+pos[0]; patch rows get b_pe+pos[i]
    cls_row = params["cls"].reshape(1, D_MODEL) + params["pos"][0, 0:1]
    patch_rows = params["b_pe"] + params["pos"][0, 1:]
    emb_add = jnp.tile(jnp.concatenate([cls_row, patch_rows], axis=0), (B, 1))

    # block-diagonal attention bias and mean-pooling matrix (static given B, SEQ)
    ids = jnp.arange(N_TOK, dtype=jnp.int32) // SEQ
    attn_bias = jnp.where(ids[:, None] == ids[None, :], 0.0, NEG_INF).astype(jnp.float32)
    pool = (jnp.arange(B, dtype=jnp.int32)[:, None] == ids[None, :]).astype(jnp.float32) / SEQ

    # single fused pallas_call: everything (activations + all weights) stays in VMEM.
    return pl.pallas_call(
        vit_fused_kernel,
        out_shape=jax.ShapeDtypeStruct((B, D_MODEL), jnp.float32),
    )(
        patches_full, emb_add, attn_bias, pool,
        params["w_pe"], params["ln"], params["wqkv"], params["bqkv"],
        params["wo"], params["bd"], params["w1"], params["b1"], params["w2"],
    )


if __name__ == "__main__":
    key = jax.random.PRNGKey(0)
    k_x, k_p = jax.random.split(key)
    x = jax.random.normal(k_x, (2, C_IN, IMG, IMG), jnp.float32)
    params = init_params(k_p)

    fwd = jax.jit(vit_backbone_forward)   # patch extraction fuses into the same region
    out = jax.block_until_ready(fwd(x, params))
    assert out.shape == (2, D_MODEL), out.shape
    assert bool(jnp.all(jnp.isfinite(out)))
    print("KERNEL_OK")
</pallas_src>

<mosaic_0001>
module attributes {stable_mosaic.version = 11 : i64} {
  func.func @vit_fused_kernel(%arg0: memref<10x192xf32, #tpu.memory_space<vmem>>, %arg1: memref<10x32xf32, #tpu.memory_space<vmem>>, %arg2: memref<10x10xf32, #tpu.memory_space<vmem>>, %arg3: memref<2x10xf32, #tpu.memory_space<vmem>>, %arg4: memref<192x32xf32, #tpu.memory_space<vmem>>, %arg5: memref<2x4x32xf32, #tpu.memory_space<vmem>>, %arg6: memref<2x6x32x16xf32, #tpu.memory_space<vmem>>, %arg7: memref<2x6x16xf32, #tpu.memory_space<vmem>>, %arg8: memref<2x2x16x32xf32, #tpu.memory_space<vmem>>, %arg9: memref<2x2x32xf32, #tpu.memory_space<vmem>>, %arg10: memref<2x32x64xf32, #tpu.memory_space<vmem>>, %arg11: memref<2x1x64xf32, #tpu.memory_space<vmem>>, %arg12: memref<2x64x32xf32, #tpu.memory_space<vmem>>, %arg13: memref<2x32xf32, #tpu.memory_space<vmem>>) attributes {dimension_semantics = [], scalar_prefetch = 0 : i64, scratch_operands = 0 : i64, tpu.core_type = #tpu.core_type<tc>} {
    %c0 = arith.constant 0 : index
    %c0_0 = arith.constant 0 : index
    %0 = vector.load %arg0[%c0, %c0_0] : memref<10x192xf32, #tpu.memory_space<vmem>>, vector<10x192xf32>
    %c0_1 = arith.constant 0 : index
    %c0_2 = arith.constant 0 : index
    %1 = vector.load %arg4[%c0_1, %c0_2] : memref<192x32xf32, #tpu.memory_space<vmem>>, vector<192x32xf32>
    %cst = arith.constant dense<0.000000e+00> : vector<10x32xf32>
    %2 = tpu.matmul %0, %1, %cst {dimension_numbers = #tpu.dot_dimension_numbers<[1], [0], [0], [1], [0, 0, 1, 1], [], []>} : vector<10x192xf32>, vector<192x32xf32>, vector<10x32xf32> -> vector<10x32xf32>
    %c0_3 = arith.constant 0 : index
    %c0_4 = arith.constant 0 : index
    %3 = vector.load %arg1[%c0_3, %c0_4] : memref<10x32xf32, #tpu.memory_space<vmem>>, vector<10x32xf32>
    %4 = arith.addf %2, %3 : vector<10x32xf32>
    %c0_5 = arith.constant 0 : index
    %c0_6 = arith.constant 0 : index
    %5 = vector.load %arg2[%c0_5, %c0_6] : memref<10x10xf32, #tpu.memory_space<vmem>>, vector<10x10xf32>
    %c0_7 = arith.constant 0 : index
    %c0_8 = arith.constant 0 : index
    %c0_9 = arith.constant 0 : index
    %6 = vector.load %arg5[%c0_7, %c0_8, %c0_9] : memref<2x4x32xf32, #tpu.memory_space<vmem>>, vector<1x1x32xf32>
    %7 = vector.shape_cast %6 : vector<1x1x32xf32> to vector<1x32xf32>
    %c0_10 = arith.constant 0 : index
    %c1 = arith.constant 1 : index
    %c0_11 = arith.constant 0 : index
    %8 = vector.load %arg5[%c0_10, %c1, %c0_11] : memref<2x4x32xf32, #tpu.memory_space<vmem>>, vector<1x1x32xf32>
    %9 = vector.shape_cast %8 : vector<1x1x32xf32> to vector<1x32xf32>
    %cst_12 = arith.constant dense<0.000000e+00> : vector<10xf32>
    %10 = vector.multi_reduction <add>, %4, %cst_12 [1] : vector<10x32xf32> to vector<10xf32>
    %11 = vector.shape_cast %10 : vector<10xf32> to vector<10x1xf32>
    %cst_13 = arith.constant 3.200000e+01 : f32
    %12 = vector.broadcast %cst_13 : f32 to vector<10x1xf32>
    %13 = arith.divf %11, %12 : vector<10x1xf32>
    %14 = vector.broadcast %13 : vector<10x1xf32> to vector<10x32xf32>
    %15 = arith.subf %4, %14 : vector<10x32xf32>
    %16 = arith.mulf %15, %15 : vector<10x32xf32>
    %cst_14 = arith.constant dense<0.000000e+00> : vector<10xf32>
    %17 = vector.multi_reduction <add>, %16, %cst_14 [1] : vector<10x32xf32> to vector<10xf32>
    %18 = vector.shape_cast %17 : vector<10xf32> to vector<10x1xf32>
    %cst_15 = arith.constant 3.200000e+01 : f32
    %19 = vector.broadcast %cst_15 : f32 to vector<10x1xf32>
    %20 = arith.divf %18, %19 : vector<10x1xf32>
    %21 = vector.broadcast %13 : vector<10x1xf32> to vector<10x32xf32>
    %22 = arith.subf %4, %21 : vector<10x32xf32>
    %cst_16 = arith.constant 9.99999996E-13 : f32
    %23 = vector.broadcast %cst_16 : f32 to vector<10x1xf32>
    %24 = arith.addf %20, %23 : vector<10x1xf32>
    %25 = math.rsqrt %24 : vector<10x1xf32>
    %26 = vector.broadcast %25 : vector<10x1xf32> to vector<10x32xf32>
    %27 = arith.mulf %22, %26 : vector<10x32xf32>
    %28 = vector.broadcast %7 : vector<1x32xf32> to vector<10x32xf32>
    %29 = arith.mulf %27, %28 : vector<10x32xf32>
    %30 = vector.broadcast %9 : vector<1x32xf32> to vector<10x32xf32>
    %31 = arith.addf %29, %30 : vector<10x32xf32>
    %cst_17 = arith.constant 0.000000e+00 : f32
    %32 = vector.broadcast %cst_17 : f32 to vector<10x32xf32>
    %c0_18 = arith.constant 0 : index
    %c0_19 = arith.constant 0 : index
    %c0_20 = arith.constant 0 : index
    %33 = vector.load %arg9[%c0_18, %c0_19, %c0_20] : memref<2x2x32xf32, #tpu.memory_space<vmem>>, vector<1x1x32xf32>
    %34 = vector.shape_cast %33 : vector<1x1x32xf32> to vector<1x32xf32>
    %35 = vector.broadcast %34 : vector<1x32xf32> to vector<10x32xf32>
    %36 = arith.addf %32, %35 : vector<10x32xf32>
    %c0_21 = arith.constant 0 : index
    %c0_22 = arith.constant 0 : index
    %c0_23 = arith.constant 0 : index
    %c0_24 = arith.constant 0 : index
    %37 = vector.load %arg6[%c0_21, %c0_22, %c0_23, %c0_24] : memref<2x6x32x16xf32, #tpu.memory_space<vmem>>, vector<1x1x32x16xf32>
    %38 = vector.shape_cast %37 : vector<1x1x32x16xf32> to vector<32x16xf32>
    %cst_25 = arith.constant dense<0.000000e+00> : vector<10x16xf32>
    %39 = tpu.matmul %31, %38, %cst_25 {dimension_numbers = #tpu.dot_dimension_numbers<[1], [0], [0], [1], [0, 0, 1, 1], [], []>} : vector<10x32xf32>, vector<32x16xf32>, vector<10x16xf32> -> vector<10x16xf32>
    %c0_26 = arith.constant 0 : index
    %c0_27 = arith.constant 0 : index
    %c0_28 = arith.constant 0 : index
    %40 = vector.load %arg7[%c0_26, %c0_27, %c0_28] : memref<2x6x16xf32, #tpu.memory_space<vmem>>, vector<1x1x16xf32>
    %41 = vector.shape_cast %40 : vector<1x1x16xf32> to vector<1x16xf32>
    %42 = vector.broadcast %41 : vector<1x16xf32> to vector<10x16xf32>
    %43 = arith.addf %39, %42 : vector<10x16xf32>
    %c0_29 = arith.constant 0 : index
    %c2 = arith.constant 2 : index
    %c0_30 = arith.constant 0 : index
    %c0_31 = arith.constant 0 : index
    %44 = vector.load %arg6[%c0_29, %c2, %c0_30, %c0_31] : memref<2x6x32x16xf32, #tpu.memory_space<vmem>>, vector<1x1x32x16xf32>
    %45 = vector.shape_cast %44 : vector<1x1x32x16xf32> to vector<32x16xf32>
    %cst_32 = arith.constant dense<0.000000e+00> : vector<10x16xf32>
    %46 = tpu.matmul %31, %45, %cst_32 {dimension_numbers = #tpu.dot_dimension_numbers<[1], [0], [0], [1], [0, 0, 1, 1], [], []>} : vector<10x32xf32>, vector<32x16xf32>, vector<10x16xf32> -> vector<10x16xf32>
    %c0_33 = arith.constant 0 : index
    %c2_34 = arith.constant 2 : index
    %c0_35 = arith.constant 0 : index
    %47 = vector.load %arg7[%c0_33, %c2_34, %c0_35] : memref<2x6x16xf32, #tpu.memory_space<vmem>>, vector<1x1x16xf32>
    %48 = vector.shape_cast %47 : vector<1x1x16xf32> to vector<1x16xf32>
    %49 = vector.broadcast %48 : vector<1x16xf32> to vector<10x16xf32>
    %50 = arith.addf %46, %49 : vector<10x16xf32>
    %c0_36 = arith.constant 0 : index
    %c4 = arith.constant 4 : index
    %c0_37 = arith.constant 0 : index
    %c0_38 = arith.constant 0 : index
    %51 = vector.load %arg6[%c0_36, %c4, %c0_37, %c0_38] : memref<2x6x32x16xf32, #tpu.memory_space<vmem>>, vector<1x1x32x16xf32>
    %52 = vector.shape_cast %51 : vector<1x1x32x16xf32> to vector<32x16xf32>
    %cst_39 = arith.constant dense<0.000000e+00> : vector<10x16xf32>
    %53 = tpu.matmul %31, %52, %cst_39 {dimension_numbers = #tpu.dot_dimension_numbers<[1], [0], [0], [1], [0, 0, 1, 1], [], []>} : vector<10x32xf32>, vector<32x16xf32>, vector<10x16xf32> -> vector<10x16xf32>
    %c0_40 = arith.constant 0 : index
    %c4_41 = arith.constant 4 : index
    %c0_42 = arith.constant 0 : index
    %54 = vector.load %arg7[%c0_40, %c4_41, %c0_42] : memref<2x6x16xf32, #tpu.memory_space<vmem>>, vector<1x1x16xf32>
    %55 = vector.shape_cast %54 : vector<1x1x16xf32> to vector<1x16xf32>
    %56 = vector.broadcast %55 : vector<1x16xf32> to vector<10x16xf32>
    %57 = arith.addf %53, %56 : vector<10x16xf32>
    %cst_43 = arith.constant dense<0.000000e+00> : vector<10x10xf32>
    %58 = tpu.matmul %43, %50, %cst_43 {dimension_numbers = #tpu.dot_dimension_numbers<[1], [1], [0], [0], [0, 0, 1, 0], [], []>} : vector<10x16xf32>, vector<10x16xf32>, vector<10x10xf32> -> vector<10x10xf32>
    %59 = arith.addf %58, %5 : vector<10x10xf32>
    %cst_44 = arith.constant dense<0xFF800000> : vector<10xf32>
    %60 = vector.multi_reduction <maximumf>, %59, %cst_44 [1] : vector<10x10xf32> to vector<10xf32>
    %61 = vector.shape_cast %60 : vector<10xf32> to vector<10x1xf32>
    %62 = vector.broadcast %61 : vector<10x1xf32> to vector<10x10xf32>
    %63 = arith.subf %59, %62 : vector<10x10xf32>
    %64 = math.exp %63 : vector<10x10xf32>
    %cst_45 = arith.constant dense<0.000000e+00> : vector<10xf32>
    %65 = vector.multi_reduction <add>, %64, %cst_45 [1] : vector<10x10xf32> to vector<10xf32>
    %66 = vector.shape_cast %65 : vector<10xf32> to vector<10x1xf32>
    %67 = tpu.reciprocal %66 {approx = true} : vector<10x1xf32> -> vector<10x1xf32>
    %68 = vector.broadcast %67 : vector<10x1xf32> to vector<10x10xf32>
    %69 = arith.mulf %64, %68 : vector<10x10xf32>
    %cst_46 = arith.constant dense<0.000000e+00> : vector<10x16xf32>
    %70 = tpu.matmul %69, %57, %cst_46 {dimension_numbers = #tpu.dot_dimension_numbers<[1], [0], [0], [1], [0, 0, 1, 1], [], []>} : vector<10x10xf32>, vector<10x16xf32>, vector<10x16xf32> -> vector<10x16xf32>
    %c0_47 = arith.constant 0 : index
    %c0_48 = arith.constant 0 : index
    %c0_49 = arith.constant 0 : index
    %c0_50 = arith.constant 0 : index
    %71 = vector.load %arg8[%c0_47, %c0_48, %c0_49, %c0_50] : memref<2x2x16x32xf32, #tpu.memory_space<vmem>>, vector<1x1x16x32xf32>
    %72 = vector.shape_cast %71 : vector<1x1x16x32xf32> to vector<16x32xf32>
    %cst_51 = arith.constant dense<0.000000e+00> : vector<10x32xf32>
    %73 = tpu.matmul %70, %72, %cst_51 {dimension_numbers = #tpu.dot_dimension_numbers<[1], [0], [0], [1], [0, 0, 1, 1], [], []>} : vector<10x16xf32>, vector<16x32xf32>, vector<10x32xf32> -> vector<10x32xf32>
    %74 = arith.addf %36, %73 : vector<10x32xf32>
    %c0_52 = arith.constant 0 : index
    %c1_53 = arith.constant 1 : index
    %c0_54 = arith.constant 0 : index
    %c0_55 = arith.constant 0 : index
    %75 = vector.load %arg6[%c0_52, %c1_53, %c0_54, %c0_55] : memref<2x6x32x16xf32, #tpu.memory_space<vmem>>, vector<1x1x32x16xf32>
    %76 = vector.shape_cast %75 : vector<1x1x32x16xf32> to vector<32x16xf32>
    %cst_56 = arith.constant dense<0.000000e+00> : vector<10x16xf32>
    %77 = tpu.matmul %31, %76, %cst_56 {dimension_numbers = #tpu.dot_dimension_numbers<[1], [0], [0], [1], [0, 0, 1, 1], [], []>} : vector<10x32xf32>, vector<32x16xf32>, vector<10x16xf32> -> vector<10x16xf32>
    %c0_57 = arith.constant 0 : index
    %c1_58 = arith.constant 1 : index
    %c0_59 = arith.constant 0 : index
    %78 = vector.load %arg7[%c0_57, %c1_58, %c0_59] : memref<2x6x16xf32, #tpu.memory_space<vmem>>, vector<1x1x16xf32>
    %79 = vector.shape_cast %78 : vector<1x1x16xf32> to vector<1x16xf32>
    %80 = vector.broadcast %79 : vector<1x16xf32> to vector<10x16xf32>
    %81 = arith.addf %77, %80 : vector<10x16xf32>
    %c0_60 = arith.constant 0 : index
    %c3 = arith.constant 3 : index
    %c0_61 = arith.constant 0 : index
    %c0_62 = arith.constant 0 : index
    %82 = vector.load %arg6[%c0_60, %c3, %c0_61, %c0_62] : memref<2x6x32x16xf32, #tpu.memory_space<vmem>>, vector<1x1x32x16xf32>
    %83 = vector.shape_cast %82 : vector<1x1x32x16xf32> to vector<32x16xf32>
    %cst_63 = arith.constant dense<0.000000e+00> : vector<10x16xf32>
    %84 = tpu.matmul %31, %83, %cst_63 {dimension_numbers = #tpu.dot_dimension_numbers<[1], [0], [0], [1], [0, 0, 1, 1], [], []>} : vector<10x32xf32>, vector<32x16xf32>, vector<10x16xf32> -> vector<10x16xf32>
    %c0_64 = arith.constant 0 : index
    %c3_65 = arith.constant 3 : index
    %c0_66 = arith.constant 0 : index
    %85 = vector.load %arg7[%c0_64, %c3_65, %c0_66] : memref<2x6x16xf32, #tpu.memory_space<vmem>>, vector<1x1x16xf32>
    %86 = vector.shape_cast %85 : vector<1x1x16xf32> to vector<1x16xf32>
    %87 = vector.broadcast %86 : vector<1x16xf32> to vector<10x16xf32>
    %88 = arith.addf %84, %87 : vector<10x16xf32>
    %c0_67 = arith.constant 0 : index
    %c5 = arith.constant 5 : index
    %c0_68 = arith.constant 0 : index
    %c0_69 = arith.constant 0 : index
    %89 = vector.load %arg6[%c0_67, %c5, %c0_68, %c0_69] : memref<2x6x32x16xf32, #tpu.memory_space<vmem>>, vector<1x1x32x16xf32>
    %90 = vector.shape_cast %89 : vector<1x1x32x16xf32> to vector<32x16xf32>
    %cst_70 = arith.constant dense<0.000000e+00> : vector<10x16xf32>
    %91 = tpu.matmul %31, %90, %cst_70 {dimension_numbers = #tpu.dot_dimension_numbers<[1], [0], [0], [1], [0, 0, 1, 1], [], []>} : vector<10x32xf32>, vector<32x16xf32>, vector<10x16xf32> -> vector<10x16xf32>
    %c0_71 = arith.constant 0 : index
    %c5_72 = arith.constant 5 : index
    %c0_73 = arith.constant 0 : index
    %92 = vector.load %arg7[%c0_71, %c5_72, %c0_73] : memref<2x6x16xf32, #tpu.memory_space<vmem>>, vector<1x1x16xf32>
    %93 = vector.shape_cast %92 : vector<1x1x16xf32> to vector<1x16xf32>
    %94 = vector.broadcast %93 : vector<1x16xf32> to vector<10x16xf32>
    %95 = arith.addf %91, %94 : vector<10x16xf32>
    %cst_74 = arith.constant dense<0.000000e+00> : vector<10x10xf32>
    %96 = tpu.matmul %81, %88, %cst_74 {dimension_numbers = #tpu.dot_dimension_numbers<[1], [1], [0], [0], [0, 0, 1, 0], [], []>} : vector<10x16xf32>, vector<10x16xf32>, vector<10x10xf32> -> vector<10x10xf32>
    %97 = arith.addf %96, %5 : vector<10x10xf32>
    %cst_75 = arith.constant dense<0xFF800000> : vector<10xf32>
    %98 = vector.multi_reduction <maximumf>, %97, %cst_75 [1] : vector<10x10xf32> to vector<10xf32>
    %99 = vector.shape_cast %98 : vector<10xf32> to vector<10x1xf32>
    %100 = vector.broadcast %99 : vector<10x1xf32> to vector<10x10xf32>
    %101 = arith.subf %97, %100 : vector<10x10xf32>
    %102 = math.exp %101 : vector<10x10xf32>
    %cst_76 = arith.constant dense<0.000000e+00> : vector<10xf32>
    %103 = vector.multi_reduction <add>, %102, %cst_76 [1] : vector<10x10xf32> to vector<10xf32>
    %104 = vector.shape_cast %103 : vector<10xf32> to vector<10x1xf32>
    %105 = tpu.reciprocal %104 {approx = true} : vector<10x1xf32> -> vector<10x1xf32>
    %106 = vector.broadcast %105 : vector<10x1xf32> to vector<10x10xf32>
    %107 = arith.mulf %102, %106 : vector<10x10xf32>
    %cst_77 = arith.constant dense<0.000000e+00> : vector<10x16xf32>
    %108 = tpu.matmul %107, %95, %cst_77 {dimension_numbers = #tpu.dot_dimension_numbers<[1], [0], [0], [1], [0, 0, 1, 1], [], []>} : vector<10x10xf32>, vector<10x16xf32>, vector<10x16xf32> -> vector<10x16xf32>
    %c0_78 = arith.constant 0 : index
    %c1_79 = arith.constant 1 : index
    %c0_80 = arith.constant 0 : index
    %c0_81 = arith.constant 0 : index
    %109 = vector.load %arg8[%c0_78, %c1_79, %c0_80, %c0_81] : memref<2x2x16x32xf32, #tpu.memory_space<vmem>>, vector<1x1x16x32xf32>
    %110 = vector.shape_cast %109 : vector<1x1x16x32xf32> to vector<16x32xf32>
    %cst_82 = arith.constant dense<0.000000e+00> : vector<10x32xf32>
    %111 = tpu.matmul %108, %110, %cst_82 {dimension_numbers = #tpu.dot_dimension_numbers<[1], [0], [0], [1], [0, 0, 1, 1], [], []>} : vector<10x16xf32>, vector<16x32xf32>, vector<10x32xf32> -> vector<10x32xf32>
    %112 = arith.addf %74, %111 : vector<10x32xf32>
    %113 = arith.addf %4, %112 : vector<10x32xf32>
    %c0_83 = arith.constant 0 : index
    %c2_84 = arith.constant 2 : index
    %c0_85 = arith.constant 0 : index
    %114 = vector.load %arg5[%c0_83, %c2_84, %c0_85] : memref<2x4x32xf32, #tpu.memory_space<vmem>>, vector<1x1x32xf32>
    %115 = vector.shape_cast %114 : vector<1x1x32xf32> to vector<1x32xf32>
    %c0_86 = arith.constant 0 : index
    %c3_87 = arith.constant 3 : index
    %c0_88 = arith.constant 0 : index
    %116 = vector.load %arg5[%c0_86, %c3_87, %c0_88] : memref<2x4x32xf32, #tpu.memory_space<vmem>>, vector<1x1x32xf32>
    %117 = vector.shape_cast %116 : vector<1x1x32xf32> to vector<1x32xf32>
    %cst_89 = arith.constant dense<0.000000e+00> : vector<10xf32>
    %118 = vector.multi_reduction <add>, %113, %cst_89 [1] : vector<10x32xf32> to vector<10xf32>
    %119 = vector.shape_cast %118 : vector<10xf32> to vector<10x1xf32>
    %cst_90 = arith.constant 3.200000e+01 : f32
    %120 = vector.broadcast %cst_90 : f32 to vector<10x1xf32>
    %121 = arith.divf %119, %120 : vector<10x1xf32>
    %122 = vector.broadcast %121 : vector<10x1xf32> to vector<10x32xf32>
    %123 = arith.subf %113, %122 : vector<10x32xf32>
    %124 = arith.mulf %123, %123 : vector<10x32xf32>
    %cst_91 = arith.constant dense<0.000000e+00> : vector<10xf32>
    %125 = vector.multi_reduction <add>, %124, %cst_91 [1] : vector<10x32xf32> to vector<10xf32>
    %126 = vector.shape_cast %125 : vector<10xf32> to vector<10x1xf32>
    %cst_92 = arith.constant 3.200000e+01 : f32
    %127 = vector.broadcast %cst_92 : f32 to vector<10x1xf32>
    %128 = arith.divf %126, %127 : vector<10x1xf32>
    %129 = vector.broadcast %121 : vector<10x1xf32> to vector<10x32xf32>
    %130 = arith.subf %113, %129 : vector<10x32xf32>
    %cst_93 = arith.constant 9.99999996E-13 : f32
    %131 = vector.broadcast %cst_93 : f32 to vector<10x1xf32>
    %132 = arith.addf %128, %131 : vector<10x1xf32>
    %133 = math.rsqrt %132 : vector<10x1xf32>
    %134 = vector.broadcast %133 : vector<10x1xf32> to vector<10x32xf32>
    %135 = arith.mulf %130, %134 : vector<10x32xf32>
    %136 = vector.broadcast %115 : vector<1x32xf32> to vector<10x32xf32>
    %137 = arith.mulf %135, %136 : vector<10x32xf32>
    %138 = vector.broadcast %117 : vector<1x32xf32> to vector<10x32xf32>
    %139 = arith.addf %137, %138 : vector<10x32xf32>
    %c0_94 = arith.constant 0 : index
    %c0_95 = arith.constant 0 : index
    %c0_96 = arith.constant 0 : index
    %140 = vector.load %arg10[%c0_94, %c0_95, %c0_96] : memref<2x32x64xf32, #tpu.memory_space<vmem>>, vector<1x32x64xf32>
    %141 = vector.shape_cast %140 : vector<1x32x64xf32> to vector<32x64xf32>
    %cst_97 = arith.constant dense<0.000000e+00> : vector<10x64xf32>
    %142 = tpu.matmul %139, %141, %cst_97 {dimension_numbers = #tpu.dot_dimension_numbers<[1], [0], [0], [1], [0, 0, 1, 1], [], []>} : vector<10x32xf32>, vector<32x64xf32>, vector<10x64xf32> -> vector<10x64xf32>
    %c0_98 = arith.constant 0 : index
    %c0_99 = arith.constant 0 : index
    %c0_100 = arith.constant 0 : index
    %143 = vector.load %arg11[%c0_98, %c0_99, %c0_100] : memref<2x1x64xf32, #tpu.memory_space<vmem>>, vector<1x1x64xf32>
    %144 = vector.shape_cast %143 : vector<1x1x64xf32> to vector<1x64xf32>
    %145 = vector.broadcast %144 : vector<1x64xf32> to vector<10x64xf32>
    %146 = arith.addf %142, %145 : vector<10x64xf32>
    %147 = arith.mulf %146, %146 : vector<10x64xf32>
    %148 = arith.mulf %146, %147 : vector<10x64xf32>
    %cst_101 = arith.constant 4.471500e-02 : f32
    %149 = vector.broadcast %cst_101 : f32 to vector<10x64xf32>
    %150 = arith.mulf %149, %148 : vector<10x64xf32>
    %151 = arith.addf %146, %150 : vector<10x64xf32>
    %cst_102 = arith.constant 0.797884583 : f32
    %152 = vector.broadcast %cst_102 : f32 to vector<10x64xf32>
    %153 = arith.mulf %152, %151 : vector<10x64xf32>
    %154 = math.tanh %153 : vector<10x64xf32>
    %cst_103 = arith.constant 1.000000e+00 : f32
    %155 = vector.broadcast %cst_103 : f32 to vector<10x64xf32>
    %156 = arith.addf %155, %154 : vector<10x64xf32>
    %cst_104 = arith.constant 5.000000e-01 : f32
    %157 = vector.broadcast %cst_104 : f32 to vector<10x64xf32>
    %158 = arith.mulf %157, %156 : vector<10x64xf32>
    %159 = arith.mulf %146, %158 : vector<10x64xf32>
    %c0_105 = arith.constant 0 : index
    %c0_106 = arith.constant 0 : index
    %c0_107 = arith.constant 0 : index
    %160 = vector.load %arg12[%c0_105, %c0_106, %c0_107] : memref<2x64x32xf32, #tpu.memory_space<vmem>>, vector<1x64x32xf32>
    %161 = vector.shape_cast %160 : vector<1x64x32xf32> to vector<64x32xf32>
    %cst_108 = arith.constant dense<0.000000e+00> : vector<10x32xf32>
    %162 = tpu.matmul %159, %161, %cst_108 {dimension_numbers = #tpu.dot_dimension_numbers<[1], [0], [0], [1], [0, 0, 1, 1], [], []>} : vector<10x64xf32>, vector<64x32xf32>, vector<10x32xf32> -> vector<10x32xf32>
    %c0_109 = arith.constant 0 : index
    %c1_110 = arith.constant 1 : index
    %c0_111 = arith.constant 0 : index
    %163 = vector.load %arg9[%c0_109, %c1_110, %c0_111] : memref<2x2x32xf32, #tpu.memory_space<vmem>>, vector<1x1x32xf32>
    %164 = vector.shape_cast %163 : vector<1x1x32xf32> to vector<1x32xf32>
    %165 = vector.broadcast %164 : vector<1x32xf32> to vector<10x32xf32>
    %166 = arith.addf %162, %165 : vector<10x32xf32>
    %167 = arith.addf %113, %166 : vector<10x32xf32>
    %c1_112 = arith.constant 1 : index
    %c0_113 = arith.constant 0 : index
    %c0_114 = arith.constant 0 : index
    %168 = vector.load %arg5[%c1_112, %c0_113, %c0_114] : memref<2x4x32xf32, #tpu.memory_space<vmem>>, vector<1x1x32xf32>
    %169 = vector.shape_cast %168 : vector<1x1x32xf32> to vector<1x32xf32>
    %c1_115 = arith.constant 1 : index
    %c1_116 = arith.constant 1 : index
    %c0_117 = arith.constant 0 : index
    %170 = vector.load %arg5[%c1_115, %c1_116, %c0_117] : memref<2x4x32xf32, #tpu.memory_space<vmem>>, vector<1x1x32xf32>
    %171 = vector.shape_cast %170 : vector<1x1x32xf32> to vector<1x32xf32>
    %cst_118 = arith.constant dense<0.000000e+00> : vector<10xf32>
    %172 = vector.multi_reduction <add>, %167, %cst_118 [1] : vector<10x32xf32> to vector<10xf32>
    %173 = vector.shape_cast %172 : vector<10xf32> to vector<10x1xf32>
    %cst_119 = arith.constant 3.200000e+01 : f32
    %174 = vector.broadcast %cst_119 : f32 to vector<10x1xf32>
    %175 = arith.divf %173, %174 : vector<10x1xf32>
    %176 = vector.broadcast %175 : vector<10x1xf32> to vector<10x32xf32>
    %177 = arith.subf %167, %176 : vector<10x32xf32>
    %178 = arith.mulf %177, %177 : vector<10x32xf32>
    %cst_120 = arith.constant dense<0.000000e+00> : vector<10xf32>
    %179 = vector.multi_reduction <add>, %178, %cst_120 [1] : vector<10x32xf32> to vector<10xf32>
    %180 = vector.shape_cast %179 : vector<10xf32> to vector<10x1xf32>
    %cst_121 = arith.constant 3.200000e+01 : f32
    %181 = vector.broadcast %cst_121 : f32 to vector<10x1xf32>
    %182 = arith.divf %180, %181 : vector<10x1xf32>
    %183 = vector.broadcast %175 : vector<10x1xf32> to vector<10x32xf32>
    %184 = arith.subf %167, %183 : vector<10x32xf32>
    %cst_122 = arith.constant 9.99999996E-13 : f32
    %185 = vector.broadcast %cst_122 : f32 to vector<10x1xf32>
    %186 = arith.addf %182, %185 : vector<10x1xf32>
    %187 = math.rsqrt %186 : vector<10x1xf32>
    %188 = vector.broadcast %187 : vector<10x1xf32> to vector<10x32xf32>
    %189 = arith.mulf %184, %188 : vector<10x32xf32>
    %190 = vector.broadcast %169 : vector<1x32xf32> to vector<10x32xf32>
    %191 = arith.mulf %189, %190 : vector<10x32xf32>
    %192 = vector.broadcast %171 : vector<1x32xf32> to vector<10x32xf32>
    %193 = arith.addf %191, %192 : vector<10x32xf32>
    %cst_123 = arith.constant 0.000000e+00 : f32
    %194 = vector.broadcast %cst_123 : f32 to vector<10x32xf32>
    %c1_124 = arith.constant 1 : index
    %c0_125 = arith.constant 0 : index
    %c0_126 = arith.constant 0 : index
    %195 = vector.load %arg9[%c1_124, %c0_125, %c0_126] : memref<2x2x32xf32, #tpu.memory_space<vmem>>, vector<1x1x32xf32>
    %196 = vector.shape_cast %195 : vector<1x1x32xf32> to vector<1x32xf32>
    %197 = vector.broadcast %196 : vector<1x32xf32> to vector<10x32xf32>
    %198 = arith.addf %194, %197 : vector<10x32xf32>
    %c1_127 = arith.constant 1 : index
    %c0_128 = arith.constant 0 : index
    %c0_129 = arith.constant 0 : index
    %c0_130 = arith.constant 0 : index
    %199 = vector.load %arg6[%c1_127, %c0_128, %c0_129, %c0_130] : memref<2x6x32x16xf32, #tpu.memory_space<vmem>>, vector<1x1x32x16xf32>
    %200 = vector.shape_cast %199 : vector<1x1x32x16xf32> to vector<32x16xf32>
    %cst_131 = arith.constant dense<0.000000e+00> : vector<10x16xf32>
    %201 = tpu.matmul %193, %200, %cst_131 {dimension_numbers = #tpu.dot_dimension_numbers<[1], [0], [0], [1], [0, 0, 1, 1], [], []>} : vector<10x32xf32>, vector<32x16xf32>, vector<10x16xf32> -> vector<10x16xf32>
    %c1_132 = arith.constant 1 : index
    %c0_133 = arith.constant 0 : index
    %c0_134 = arith.constant 0 : index
    %202 = vector.load %arg7[%c1_132, %c0_133, %c0_134] : memref<2x6x16xf32, #tpu.memory_space<vmem>>, vector<1x1x16xf32>
    %203 = vector.shape_cast %202 : vector<1x1x16xf32> to vector<1x16xf32>
    %204 = vector.broadcast %203 : vector<1x16xf32> to vector<10x16xf32>
    %205 = arith.addf %201, %204 : vector<10x16xf32>
    %c1_135 = arith.constant 1 : index
    %c2_136 = arith.constant 2 : index
    %c0_137 = arith.constant 0 : index
    %c0_138 = arith.constant 0 : index
    %206 = vector.load %arg6[%c1_135, %c2_136, %c0_137, %c0_138] : memref<2x6x32x16xf32, #tpu.memory_space<vmem>>, vector<1x1x32x16xf32>
    %207 = vector.shape_cast %206 : vector<1x1x32x16xf32> to vector<32x16xf32>
    %cst_139 = arith.constant dense<0.000000e+00> : vector<10x16xf32>
    %208 = tpu.matmul %193, %207, %cst_139 {dimension_numbers = #tpu.dot_dimension_numbers<[1], [0], [0], [1], [0, 0, 1, 1], [], []>} : vector<10x32xf32>, vector<32x16xf32>, vector<10x16xf32> -> vector<10x16xf32>
    %c1_140 = arith.constant 1 : index
    %c2_141 = arith.constant 2 : index
    %c0_142 = arith.constant 0 : index
    %209 = vector.load %arg7[%c1_140, %c2_141, %c0_142] : memref<2x6x16xf32, #tpu.memory_space<vmem>>, vector<1x1x16xf32>
    %210 = vector.shape_cast %209 : vector<1x1x16xf32> to vector<1x16xf32>
    %211 = vector.broadcast %210 : vector<1x16xf32> to vector<10x16xf32>
    %212 = arith.addf %208, %211 : vector<10x16xf32>
    %c1_143 = arith.constant 1 : index
    %c4_144 = arith.constant 4 : index
    %c0_145 = arith.constant 0 : index
    %c0_146 = arith.constant 0 : index
    %213 = vector.load %arg6[%c1_143, %c4_144, %c0_145, %c0_146] : memref<2x6x32x16xf32, #tpu.memory_space<vmem>>, vector<1x1x32x16xf32>
    %214 = vector.shape_cast %213 : vector<1x1x32x16xf32> to vector<32x16xf32>
    %cst_147 = arith.constant dense<0.000000e+00> : vector<10x16xf32>
    %215 = tpu.matmul %193, %214, %cst_147 {dimension_numbers = #tpu.dot_dimension_numbers<[1], [0], [0], [1], [0, 0, 1, 1], [], []>} : vector<10x32xf32>, vector<32x16xf32>, vector<10x16xf32> -> vector<10x16xf32>
    %c1_148 = arith.constant 1 : index
    %c4_149 = arith.constant 4 : index
    %c0_150 = arith.constant 0 : index
    %216 = vector.load %arg7[%c1_148, %c4_149, %c0_150] : memref<2x6x16xf32, #tpu.memory_space<vmem>>, vector<1x1x16xf32>
    %217 = vector.shape_cast %216 : vector<1x1x16xf32> to vector<1x16xf32>
    %218 = vector.broadcast %217 : vector<1x16xf32> to vector<10x16xf32>
    %219 = arith.addf %215, %218 : vector<10x16xf32>
    %cst_151 = arith.constant dense<0.000000e+00> : vector<10x10xf32>
    %220 = tpu.matmul %205, %212, %cst_151 {dimension_numbers = #tpu.dot_dimension_numbers<[1], [1], [0], [0], [0, 0, 1, 0], [], []>} : vector<10x16xf32>, vector<10x16xf32>, vector<10x10xf32> -> vector<10x10xf32>
    %221 = arith.addf %220, %5 : vector<10x10xf32>
    %cst_152 = arith.constant dense<0xFF800000> : vector<10xf32>
    %222 = vector.multi_reduction <maximumf>, %221, %cst_152 [1] : vector<10x10xf32> to vector<10xf32>
    %223 = vector.shape_cast %222 : vector<10xf32> to vector<10x1xf32>
    %224 = vector.broadcast %223 : vector<10x1xf32> to vector<10x10xf32>
    %225 = arith.subf %221, %224 : vector<10x10xf32>
    %226 = math.exp %225 : vector<10x10xf32>
    %cst_153 = arith.constant dense<0.000000e+00> : vector<10xf32>
    %227 = vector.multi_reduction <add>, %226, %cst_153 [1] : vector<10x10xf32> to vector<10xf32>
    %228 = vector.shape_cast %227 : vector<10xf32> to vector<10x1xf32>
    %229 = tpu.reciprocal %228 {approx = true} : vector<10x1xf32> -> vector<10x1xf32>
    %230 = vector.broadcast %229 : vector<10x1xf32> to vector<10x10xf32>
    %231 = arith.mulf %226, %230 : vector<10x10xf32>
    %cst_154 = arith.constant dense<0.000000e+00> : vector<10x16xf32>
    %232 = tpu.matmul %231, %219, %cst_154 {dimension_numbers = #tpu.dot_dimension_numbers<[1], [0], [0], [1], [0, 0, 1, 1], [], []>} : vector<10x10xf32>, vector<10x16xf32>, vector<10x16xf32> -> vector<10x16xf32>
    %c1_155 = arith.constant 1 : index
    %c0_156 = arith.constant 0 : index
    %c0_157 = arith.constant 0 : index
    %c0_158 = arith.constant 0 : index
    %233 = vector.load %arg8[%c1_155, %c0_156, %c0_157, %c0_158] : memref<2x2x16x32xf32, #tpu.memory_space<vmem>>, vector<1x1x16x32xf32>
    %234 = vector.shape_cast %233 : vector<1x1x16x32xf32> to vector<16x32xf32>
    %cst_159 = arith.constant dense<0.000000e+00> : vector<10x32xf32>
    %235 = tpu.matmul %232, %234, %cst_159 {dimension_numbers = #tpu.dot_dimension_numbers<[1], [0], [0], [1], [0, 0, 1, 1], [], []>} : vector<10x16xf32>, vector<16x32xf32>, vector<10x32xf32> -> vector<10x32xf32>
    %236 = arith.addf %198, %235 : vector<10x32xf32>
    %c1_160 = arith.constant 1 : index
    %c1_161 = arith.constant 1 : index
    %c0_162 = arith.constant 0 : index
    %c0_163 = arith.constant 0 : index
    %237 = vector.load %arg6[%c1_160, %c1_161, %c0_162, %c0_163] : memref<2x6x32x16xf32, #tpu.memory_space<vmem>>, vector<1x1x32x16xf32>
    %238 = vector.shape_cast %237 : vector<1x1x32x16xf32> to vector<32x16xf32>
    %cst_164 = arith.constant dense<0.000000e+00> : vector<10x16xf32>
    %239 = tpu.matmul %193, %238, %cst_164 {dimension_numbers = #tpu.dot_dimension_numbers<[1], [0], [0], [1], [0, 0, 1, 1], [], []>} : vector<10x32xf32>, vector<32x16xf32>, vector<10x16xf32> -> vector<10x16xf32>
    %c1_165 = arith.constant 1 : index
    %c1_166 = arith.constant 1 : index
    %c0_167 = arith.constant 0 : index
    %240 = vector.load %arg7[%c1_165, %c1_166, %c0_167] : memref<2x6x16xf32, #tpu.memory_space<vmem>>, vector<1x1x16xf32>
    %241 = vector.shape_cast %240 : vector<1x1x16xf32> to vector<1x16xf32>
    %242 = vector.broadcast %241 : vector<1x16xf32> to vector<10x16xf32>
    %243 = arith.addf %239, %242 : vector<10x16xf32>
    %c1_168 = arith.constant 1 : index
    %c3_169 = arith.constant 3 : index
    %c0_170 = arith.constant 0 : index
    %c0_171 = arith.constant 0 : index
    %244 = vector.load %arg6[%c1_168, %c3_169, %c0_170, %c0_171] : memref<2x6x32x16xf32, #tpu.memory_space<vmem>>, vector<1x1x32x16xf32>
    %245 = vector.shape_cast %244 : vector<1x1x32x16xf32> to vector<32x16xf32>
    %cst_172 = arith.constant dense<0.000000e+00> : vector<10x16xf32>
    %246 = tpu.matmul %193, %245, %cst_172 {dimension_numbers = #tpu.dot_dimension_numbers<[1], [0], [0], [1], [0, 0, 1, 1], [], []>} : vector<10x32xf32>, vector<32x16xf32>, vector<10x16xf32> -> vector<10x16xf32>
    %c1_173 = arith.constant 1 : index
    %c3_174 = arith.constant 3 : index
    %c0_175 = arith.constant 0 : index
    %247 = vector.load %arg7[%c1_173, %c3_174, %c0_175] : memref<2x6x16xf32, #tpu.memory_space<vmem>>, vector<1x1x16xf32>
    %248 = vector.shape_cast %247 : vector<1x1x16xf32> to vector<1x16xf32>
    %249 = vector.broadcast %248 : vector<1x16xf32> to vector<10x16xf32>
    %250 = arith.addf %246, %249 : vector<10x16xf32>
    %c1_176 = arith.constant 1 : index
    %c5_177 = arith.constant 5 : index
    %c0_178 = arith.constant 0 : index
    %c0_179 = arith.constant 0 : index
    %251 = vector.load %arg6[%c1_176, %c5_177, %c0_178, %c0_179] : memref<2x6x32x16xf32, #tpu.memory_space<vmem>>, vector<1x1x32x16xf32>
    %252 = vector.shape_cast %251 : vector<1x1x32x16xf32> to vector<32x16xf32>
    %cst_180 = arith.constant dense<0.000000e+00> : vector<10x16xf32>
    %253 = tpu.matmul %193, %252, %cst_180 {dimension_numbers = #tpu.dot_dimension_numbers<[1], [0], [0], [1], [0, 0, 1, 1], [], []>} : vector<10x32xf32>, vector<32x16xf32>, vector<10x16xf32> -> vector<10x16xf32>
    %c1_181 = arith.constant 1 : index
    %c5_182 = arith.constant 5 : index
    %c0_183 = arith.constant 0 : index
    %254 = vector.load %arg7[%c1_181, %c5_182, %c0_183] : memref<2x6x16xf32, #tpu.memory_space<vmem>>, vector<1x1x16xf32>
    %255 = vector.shape_cast %254 : vector<1x1x16xf32> to vector<1x16xf32>
    %256 = vector.broadcast %255 : vector<1x16xf32> to vector<10x16xf32>
    %257 = arith.addf %253, %256 : vector<10x16xf32>
    %cst_184 = arith.constant dense<0.000000e+00> : vector<10x10xf32>
    %258 = tpu.matmul %243, %250, %cst_184 {dimension_numbers = #tpu.dot_dimension_numbers<[1], [1], [0], [0], [0, 0, 1, 0], [], []>} : vector<10x16xf32>, vector<10x16xf32>, vector<10x10xf32> -> vector<10x10xf32>
    %259 = arith.addf %258, %5 : vector<10x10xf32>
    %cst_185 = arith.constant dense<0xFF800000> : vector<10xf32>
    %260 = vector.multi_reduction <maximumf>, %259, %cst_185 [1] : vector<10x10xf32> to vector<10xf32>
    %261 = vector.shape_cast %260 : vector<10xf32> to vector<10x1xf32>
    %262 = vector.broadcast %261 : vector<10x1xf32> to vector<10x10xf32>
    %263 = arith.subf %259, %262 : vector<10x10xf32>
    %264 = math.exp %263 : vector<10x10xf32>
    %cst_186 = arith.constant dense<0.000000e+00> : vector<10xf32>
    %265 = vector.multi_reduction <add>, %264, %cst_186 [1] : vector<10x10xf32> to vector<10xf32>
    %266 = vector.shape_cast %265 : vector<10xf32> to vector<10x1xf32>
    %267 = tpu.reciprocal %266 {approx = true} : vector<10x1xf32> -> vector<10x1xf32>
    %268 = vector.broadcast %267 : vector<10x1xf32> to vector<10x10xf32>
    %269 = arith.mulf %264, %268 : vector<10x10xf32>
    %cst_187 = arith.constant dense<0.000000e+00> : vector<10x16xf32>
    %270 = tpu.matmul %269, %257, %cst_187 {dimension_numbers = #tpu.dot_dimension_numbers<[1], [0], [0], [1], [0, 0, 1, 1], [], []>} : vector<10x10xf32>, vector<10x16xf32>, vector<10x16xf32> -> vector<10x16xf32>
    %c1_188 = arith.constant 1 : index
    %c1_189 = arith.constant 1 : index
    %c0_190 = arith.constant 0 : index
    %c0_191 = arith.constant 0 : index
    %271 = vector.load %arg8[%c1_188, %c1_189, %c0_190, %c0_191] : memref<2x2x16x32xf32, #tpu.memory_space<vmem>>, vector<1x1x16x32xf32>
    %272 = vector.shape_cast %271 : vector<1x1x16x32xf32> to vector<16x32xf32>
    %cst_192 = arith.constant dense<0.000000e+00> : vector<10x32xf32>
    %273 = tpu.matmul %270, %272, %cst_192 {dimension_numbers = #tpu.dot_dimension_numbers<[1], [0], [0], [1], [0, 0, 1, 1], [], []>} : vector<10x16xf32>, vector<16x32xf32>, vector<10x32xf32> -> vector<10x32xf32>
    %274 = arith.addf %236, %273 : vector<10x32xf32>
    %275 = arith.addf %167, %274 : vector<10x32xf32>
    %c1_193 = arith.constant 1 : index
    %c2_194 = arith.constant 2 : index
    %c0_195 = arith.constant 0 : index
    %276 = vector.load %arg5[%c1_193, %c2_194, %c0_195] : memref<2x4x32xf32, #tpu.memory_space<vmem>>, vector<1x1x32xf32>
    %277 = vector.shape_cast %276 : vector<1x1x32xf32> to vector<1x32xf32>
    %c1_196 = arith.constant 1 : index
    %c3_197 = arith.constant 3 : index
    %c0_198 = arith.constant 0 : index
    %278 = vector.load %arg5[%c1_196, %c3_197, %c0_198] : memref<2x4x32xf32, #tpu.memory_space<vmem>>, vector<1x1x32xf32>
    %279 = vector.shape_cast %278 : vector<1x1x32xf32> to vector<1x32xf32>
    %cst_199 = arith.constant dense<0.000000e+00> : vector<10xf32>
    %280 = vector.multi_reduction <add>, %275, %cst_199 [1] : vector<10x32xf32> to vector<10xf32>
    %281 = vector.shape_cast %280 : vector<10xf32> to vector<10x1xf32>
    %cst_200 = arith.constant 3.200000e+01 : f32
    %282 = vector.broadcast %cst_200 : f32 to vector<10x1xf32>
    %283 = arith.divf %281, %282 : vector<10x1xf32>
    %284 = vector.broadcast %283 : vector<10x1xf32> to vector<10x32xf32>
    %285 = arith.subf %275, %284 : vector<10x32xf32>
    %286 = arith.mulf %285, %285 : vector<10x32xf32>
    %cst_201 = arith.constant dense<0.000000e+00> : vector<10xf32>
    %287 = vector.multi_reduction <add>, %286, %cst_201 [1] : vector<10x32xf32> to vector<10xf32>
    %288 = vector.shape_cast %287 : vector<10xf32> to vector<10x1xf32>
    %cst_202 = arith.constant 3.200000e+01 : f32
    %289 = vector.broadcast %cst_202 : f32 to vector<10x1xf32>
    %290 = arith.divf %288, %289 : vector<10x1xf32>
    %291 = vector.broadcast %283 : vector<10x1xf32> to vector<10x32xf32>
    %292 = arith.subf %275, %291 : vector<10x32xf32>
    %cst_203 = arith.constant 9.99999996E-13 : f32
    %293 = vector.broadcast %cst_203 : f32 to vector<10x1xf32>
    %294 = arith.addf %290, %293 : vector<10x1xf32>
    %295 = math.rsqrt %294 : vector<10x1xf32>
    %296 = vector.broadcast %295 : vector<10x1xf32> to vector<10x32xf32>
    %297 = arith.mulf %292, %296 : vector<10x32xf32>
    %298 = vector.broadcast %277 : vector<1x32xf32> to vector<10x32xf32>
    %299 = arith.mulf %297, %298 : vector<10x32xf32>
    %300 = vector.broadcast %279 : vector<1x32xf32> to vector<10x32xf32>
    %301 = arith.addf %299, %300 : vector<10x32xf32>
    %c1_204 = arith.constant 1 : index
    %c0_205 = arith.constant 0 : index
    %c0_206 = arith.constant 0 : index
    %302 = vector.load %arg10[%c1_204, %c0_205, %c0_206] : memref<2x32x64xf32, #tpu.memory_space<vmem>>, vector<1x32x64xf32>
    %303 = vector.shape_cast %302 : vector<1x32x64xf32> to vector<32x64xf32>
    %cst_207 = arith.constant dense<0.000000e+00> : vector<10x64xf32>
    %304 = tpu.matmul %301, %303, %cst_207 {dimension_numbers = #tpu.dot_dimension_numbers<[1], [0], [0], [1], [0, 0, 1, 1], [], []>} : vector<10x32xf32>, vector<32x64xf32>, vector<10x64xf32> -> vector<10x64xf32>
    %c1_208 = arith.constant 1 : index
    %c0_209 = arith.constant 0 : index
    %c0_210 = arith.constant 0 : index
    %305 = vector.load %arg11[%c1_208, %c0_209, %c0_210] : memref<2x1x64xf32, #tpu.memory_space<vmem>>, vector<1x1x64xf32>
    %306 = vector.shape_cast %305 : vector<1x1x64xf32> to vector<1x64xf32>
    %307 = vector.broadcast %306 : vector<1x64xf32> to vector<10x64xf32>
    %308 = arith.addf %304, %307 : vector<10x64xf32>
    %309 = arith.mulf %308, %308 : vector<10x64xf32>
    %310 = arith.mulf %308, %309 : vector<10x64xf32>
    %cst_211 = arith.constant 4.471500e-02 : f32
    %311 = vector.broadcast %cst_211 : f32 to vector<10x64xf32>
    %312 = arith.mulf %311, %310 : vector<10x64xf32>
    %313 = arith.addf %308, %312 : vector<10x64xf32>
    %cst_212 = arith.constant 0.797884583 : f32
    %314 = vector.broadcast %cst_212 : f32 to vector<10x64xf32>
    %315 = arith.mulf %314, %313 : vector<10x64xf32>
    %316 = math.tanh %315 : vector<10x64xf32>
    %cst_213 = arith.constant 1.000000e+00 : f32
    %317 = vector.broadcast %cst_213 : f32 to vector<10x64xf32>
    %318 = arith.addf %317, %316 : vector<10x64xf32>
    %cst_214 = arith.constant 5.000000e-01 : f32
    %319 = vector.broadcast %cst_214 : f32 to vector<10x64xf32>
    %320 = arith.mulf %319, %318 : vector<10x64xf32>
    %321 = arith.mulf %308, %320 : vector<10x64xf32>
    %c1_215 = arith.constant 1 : index
    %c0_216 = arith.constant 0 : index
    %c0_217 = arith.constant 0 : index
    %322 = vector.load %arg12[%c1_215, %c0_216, %c0_217] : memref<2x64x32xf32, #tpu.memory_space<vmem>>, vector<1x64x32xf32>
    %323 = vector.shape_cast %322 : vector<1x64x32xf32> to vector<64x32xf32>
    %cst_218 = arith.constant dense<0.000000e+00> : vector<10x32xf32>
    %324 = tpu.matmul %321, %323, %cst_218 {dimension_numbers = #tpu.dot_dimension_numbers<[1], [0], [0], [1], [0, 0, 1, 1], [], []>} : vector<10x64xf32>, vector<64x32xf32>, vector<10x32xf32> -> vector<10x32xf32>
    %c1_219 = arith.constant 1 : index
    %c1_220 = arith.constant 1 : index
    %c0_221 = arith.constant 0 : index
    %325 = vector.load %arg9[%c1_219, %c1_220, %c0_221] : memref<2x2x32xf32, #tpu.memory_space<vmem>>, vector<1x1x32xf32>
    %326 = vector.shape_cast %325 : vector<1x1x32xf32> to vector<1x32xf32>
    %327 = vector.broadcast %326 : vector<1x32xf32> to vector<10x32xf32>
    %328 = arith.addf %324, %327 : vector<10x32xf32>
    %329 = arith.addf %275, %328 : vector<10x32xf32>
    %c0_222 = arith.constant 0 : index
    %c0_223 = arith.constant 0 : index
    %330 = vector.load %arg3[%c0_222, %c0_223] : memref<2x10xf32, #tpu.memory_space<vmem>>, vector<2x10xf32>
    %cst_224 = arith.constant dense<0.000000e+00> : vector<2x32xf32>
    %331 = tpu.matmul %330, %329, %cst_224 {dimension_numbers = #tpu.dot_dimension_numbers<[1], [0], [0], [1], [0, 0, 1, 1], [], []>} : vector<2x10xf32>, vector<10x32xf32>, vector<2x32xf32> -> vector<2x32xf32>
    %c0_225 = arith.constant 0 : index
    %c0_226 = arith.constant 0 : index
    %332 = vector.load %arg13[%c0_225, %c0_226] : memref<2x32xf32, #tpu.memory_space<vmem>>, vector<2x32xf32>
    tpu.vector_store %arg13[%c0_225, %c0_226], %331 {strides = array<i32>} : memref<2x32xf32, #tpu.memory_space<vmem>>, vector<2x32xf32>,
    return
  }
}

</mosaic_0001>

<bundles_post_ra>
// kernel: tile.9
= control target key start
LH: loop header
LB: loop body
LE: loop exit
PB: predicated region body
PF: predicated region fallthrough
CT: control target
= control target key end

     0   :  { %vm3_vm0 = vcmask 261120   ;;  %s34_s0 = inlined_call_operand.vmem [shape: f32[2,5,32], index: 0, kind: input, shape index: {}]   ;;  %s35_s1 = inlined_call_operand.vmem [shape: f32[10,32], index: 1, kind: output, shape index: {}]  }
   0x1   :  { %v2_v0 = vld [vmem:[%s34_s0] sm:$0x1f]   ;;  %v10_v1 = vld [vmem:[%s34_s0 + $0x8] sm:$0x1f]  }
   0x2   :  { %4 = vst.msk [vmem:[%s35_s1] sm:$0x1f] %vm3_vm0, %v2_v0   ;;  %11 = vst.msk [vmem:[%s35_s1 + $0x5] sm:$0x1f] %vm3_vm0, %v10_v1  }

// kernel: vit_backbone_forward.1
= control target key start
LH: loop header
LB: loop body
LE: loop exit
PB: predicated region body
PF: predicated region fallthrough
CT: control target
= control target key end

     0   :  { %v3950_v3 = vmov 0.0|0.0   ;;  %vm75_vm0 = vcmask 523264   ;;  %s4690_s0 = inlined_call_operand.vmem [shape: f32[10,192], index: 0, kind: input, shape index: {}]   ;;  %s4691_s1 = inlined_call_operand.vmem [shape: f32[10,32], index: 1, kind: input, shape index: {}]   ;;  %s4692_s2 = inlined_call_operand.vmem [shape: f32[10,10], index: 2, kind: input, shape index: {}]   ;;  %s4693_s3 = inlined_call_operand.vmem [shape: f32[2,10], index: 3, kind: input, shape index: {}]   ;;  %s4694_s4 = inlined_call_operand.vmem [shape: f32[192,32], index: 4, kind: input, shape index: {}]   ;;  %s4695_s5 = inlined_call_operand.vmem [shape: f32[2,4,32], index: 5, kind: input, shape index: {}]   ;;  %s4696_s6 = inlined_call_operand.vmem [shape: f32[2,6,32,16], index: 6, kind: input, shape index: {}]   ;;  %s4697_s7 = inlined_call_operand.vmem [shape: f32[2,6,16], index: 7, kind: input, shape index: {}]   ;;  %s4698_s8 = inlined_call_operand.vmem [shape: f32[2,2,16,32], index: 8, kind: input, shape index: {}]   ;;  %s4699_s9 = inlined_call_operand.vmem [shape: f32[2,2,32], index: 9, kind: input, shape index: {}]   ;;  %s4700_s10 = inlined_call_operand.vmem [shape: f32[2,32,64], index: 10, kind: input, shape index: {}]   ;;  %s4701_s11 = inlined_call_operand.vmem [shape: f32[2,1,64], index: 11, kind: input, shape index: {}]   ;;  %s4702_s12 = inlined_call_operand.vmem [shape: f32[2,64,32], index: 12, kind: input, shape index: {}]   ;;  %s4703_s13 = inlined_call_operand.hbm [shape: f32[2,32], index: 13, kind: output, shape index: {}]  }
   0x1   :  { %v49_v0 = vld [vmem:[%s4694_s4] sm:$0xff]  ;;  %v50_v1 = vld [vmem:[%s4694_s4 + $0x8] sm:$0xff]  ;;  %v51_v2 = vld [vmem:[%s4694_s4 + $0x10] sm:$0xff]  ;;  %3609 = vmatprep.subr.bf16.mxu0 %v3950_v3 }
   0x2   :  { %v3610_v4 = vpack.c.bf16 %v50_v1, %v49_v0  ;;  %v52_v5 = vld [vmem:[%s4694_s4 + $0x18] sm:$0xff]  ;;  %v53_v7 = vld [vmem:[%s4694_s4 + $0x20] sm:$0xff]  ;;  %v54_v8 = vld [vmem:[%s4694_s4 + $0x28] sm:$0xff] }
   0x3   :  { %v3613_v6 = vpack.c.bf16 %v52_v5, %v51_v2  ;;  %v3616_v9 = vpack.c.bf16 %v54_v8, %v53_v7  ;;  %v55_v10 = vld [vmem:[%s4694_s4 + $0x30] sm:$0xff]  ;;  %v56_v11 = vld [vmem:[%s4694_s4 + $0x38] sm:$0xff]  ;;  %v46_v12 = vld [vmem:[%s4690_s0 + $0x8] sm:$0xff] }
   0x4   :  { %3611 = vmatpush1.bf16.msra.mxu0 %v3610_v4  ;;  %2998 = vmatprep.mubr.msk.f32.mxu0 %vm75_vm0, %v46_v12 }
   0x5   :  { %3612 = vmatprep.subr.bf16.mxu0 %v3950_v3 }
   0x8   :  { %3614 = vmatpush1.bf16.msra.mxu0 %v3613_v6 }
   0x9   :  { %3615 = vmatprep.subr.bf16.mxu0 %v3950_v3 }
   0xa   :  { %18 = vsyncpa [#allocation3], 0  ;;  %v3619_v13 = vpack.c.bf16 %v56_v11, %v55_v10  ;;  %v57_v14 = vld [vmem:[%s4694_s4 + $0x40] sm:$0xff]  ;;  %v58_v15 = vld [vmem:[%s4694_s4 + $0x48] sm:$0xff]  ;;  %vm161_vm1 = vcmask 261120   ;;  %vm165_vm2 = vcmask 254976  }
   0xb   :  { %v3622_v16 = vpack.c.bf16 %v58_v15, %v57_v14  ;;  %v59_v17 = vld [vmem:[%s4694_s4 + $0x50] sm:$0xff]  ;;  %v60_v18 = vld [vmem:[%s4694_s4 + $0x58] sm:$0xff]  ;;  %v61_v20 = vld [vmem:[%s4694_s4 + $0x60] sm:$0xff]  ;;  %vm468_vm3 = vcmask 130048   ;;  %vm586_vm5 = vcmask 1041408   ;;  %vm3951_vm6 = vmmov 1  }
   0xc   :  { %3617 = vmatpush1.bf16.msra.mxu0 %v3616_v9  ;;  %v3625_v19 = vpack.c.bf16 %v60_v18, %v59_v17  ;;  %v62_v21 = vld [vmem:[%s4694_s4 + $0x68] sm:$0xff]  ;;  %v63_v23 = vld [vmem:[%s4694_s4 + $0x70] sm:$0xff]  ;;  %v64_v24 = vld [vmem:[%s4694_s4 + $0x78] sm:$0xff]  ;;  %vm560_vm8 = vcmask 74752   ;;  %vm556_vm9 = vcmask 80896   ;;  %vm3952_vm10 = vmmov 0  }
   0xd   :  { %3618 = vmatprep.subr.bf16.mxu0 %v3950_v3  ;;  %v3628_v22 = vpack.c.bf16 %v62_v21, %v61_v20  ;;  %v3631_v25 = vpack.c.bf16 %v64_v24, %v63_v23  ;;  %v65_v26 = vld [vmem:[%s4694_s4 + $0x80] sm:$0xff]  ;;  %v66_v27 = vld [vmem:[%s4694_s4 + $0x88] sm:$0xff]  ;;  %v67_v29 = vld [vmem:[%s4694_s4 + $0x90] sm:$0xff] }
   0xe   :  { %v3634_v28 = vpack.c.bf16 %v66_v27, %v65_v26  ;;  %v68_v30 = vld [vmem:[%s4694_s4 + $0x98] sm:$0xff]  ;;  %v69_v32 = vld [vmem:[%s4694_s4 + $0xa0] sm:$0xff]  ;;  %v70_v33 = vld [vmem:[%s4694_s4 + $0xa8] sm:$0xff] }
   0xf   :  { %v3637_v31 = vpack.c.bf16 %v68_v30, %v67_v29  ;;  %v3640_v34 = vpack.c.bf16 %v70_v33, %v69_v32  ;;  %v71_v35 = vld [vmem:[%s4694_s4 + $0xb0] sm:$0xff]  ;;  %v72_v36 = vld [vmem:[%s4694_s4 + $0xb8] sm:$0xff]  ;;  %v45_v38 = vld [vmem:[%s4690_s0] sm:$0xff] }
  0x10   :  { %3620 = vmatpush1.bf16.msra.mxu0 %v3619_v13  ;;  %v3643_v37 = vpack.c.bf16 %v72_v36, %v71_v35  ;;  %v48_v39 = vld [vmem:[%s4690_s0 + $0x18] sm:$0x3]  ;;  %v47_v40 = vld [vmem:[%s4690_s0 + $0x10] sm:$0x3]  ;;  %v73_v41 = vld [vmem:[%s4691_s1] sm:$0xff]  ;;  %s3954_s0 = smov [#allocation2]  }
  0x11   :  { %3621 = vmatprep.subr.bf16.mxu0 %v3950_v3  ;;  %v74_v45 = vld [vmem:[%s4691_s1 + $0x8] sm:$0x3]  ;;  %v208_v61 = vld [vmem:[%s4696_s6] sm:$0xff]  ;;  %v210_v4 = vld [vmem:[%s4696_s6 + $0x10] sm:$0xff] }
  0x12   :  { %v209_v62 = vld [vmem:[%s4696_s6 + $0x8] sm:$0xff]  ;;  %v3036_v0 = vld [vmem:[%s4696_s6 + $0x60] sm:$0xff]  ;;  %v211_v5 = vld [vmem:[%s4696_s6 + $0x18] sm:$0xff] }
  0x13   :  { %v3645_v63 = vpack.c.bf16 %v209_v62, %v208_v61  ;;  %v3037_v1 = vld [vmem:[%s4696_s6 + $0x68] sm:$0xff]  ;;  %v3649_v6 = vpack.c.bf16 %v211_v5, %v210_v4  ;;  %v3038_v7 = vld [vmem:[%s4696_s6 + $0x70] sm:$0xff]  ;;  %v3039_v8 = vld [vmem:[%s4696_s6 + $0x78] sm:$0xff] }
  0x14   :  { %3623 = vmatpush1.bf16.msra.mxu0 %v3622_v16  ;;  %v3693_v2 = vpack.c.bf16 %v3037_v1, %v3036_v0  ;;  %v3697_v9 = vpack.c.bf16 %v3039_v8, %v3038_v7  ;;  %v3006_v10 = vld [vmem:[%s4696_s6 + $0x40] sm:$0xff]  ;;  %v3007_v11 = vld [vmem:[%s4696_s6 + $0x48] sm:$0xff]  ;;  %v3008_v27 = vld [vmem:[%s4696_s6 + $0x50] sm:$0xff] }
  0x15   :  { %3624 = vmatprep.subr.bf16.mxu0 %v3950_v3  ;;  %3646 = vmatprep.subr.bf16.mxu1 %v3645_v63  ;;  %v3653_v12 = vpack.c.bf16 %v3007_v11, %v3006_v10  ;;  %v3000_v20 = vld [vmem:[%s4695_s5] ss:$0 sm:$0xff]  ;;  %v3014_v33 = vld [vmem:[%s4696_s6 + $0x88] sm:$0xff]  ;;  %v3015_v35 = vld [vmem:[%s4696_s6 + $0x90] sm:$0xff] }
  0x16   :  { %3648 = vmatpush3.bf16.msra.mxu1 %v3645_v63  ;;  %v3013_v32 = vld [vmem:[%s4696_s6 + $0x80] sm:$0xff]  ;;  %v3016_v36 = vld [vmem:[%s4696_s6 + $0x98] sm:$0xff]  ;;  %vm4223_vm4 = vmpackc.low %vm468_vm3, %vm468_vm3 }
  0x17   :  { %3650 = vmatprep.subr.bf16.mxu1 %v3649_v6  ;;  %vm4242_vm7 = vmpackc.low %vm586_vm5, %vm3951_vm6  ;;  %v4254_v1 = vld [vmem:[%s4692_s2 + $0x8] sm:$0x3] }
  0x18   :  { %3626 = vmatpush1.bf16.msra.mxu0 %v3625_v19 }
  0x19   :  { %3627 = vmatprep.subr.bf16.mxu0 %v3950_v3 }
  0x1a   :  { %3652 = vmatpush3.bf16.msra.mxu1 %v3649_v6 }
  0x1b   :  { %3654 = vmatprep.subr.bf16.mxu1 %v3653_v12 }
  0x1c   :  { %3629 = vmatpush1.bf16.msra.mxu0 %v3628_v22  ;;  %v3001_v22 = vld [vmem:[%s4695_s5 + $0x1] ss:$0 sm:$0xff] }
  0x1d   :  { %3630 = vmatprep.subr.bf16.mxu0 %v3950_v3 }
  0x20   :  { %3632 = vmatpush1.bf16.msra.mxu0 %v3631_v25 }
  0x21   :  { %3633 = vmatprep.subr.bf16.mxu0 %v3950_v3 }
  0x24   :  { %3635 = vmatpush1.bf16.msra.mxu0 %v3634_v28  ;;  %v3009_v28 = vld [vmem:[%s4696_s6 + $0x58] sm:$0xff] }
  0x25   :  { %3636 = vmatprep.subr.bf16.mxu0 %v3950_v3 }
  0x28   :  { %3638 = vmatpush1.bf16.msra.mxu0 %v3637_v31  ;;  %v3657_v31 = vpack.c.bf16 %v3009_v28, %v3008_v27 }
  0x29   :  { %3639 = vmatprep.subr.bf16.mxu0 %v3950_v3 }
  0x2c   :  { %3641 = vmatpush1.bf16.msra.mxu0 %v3640_v34  ;;  %v3661_v34 = vpack.c.bf16 %v3014_v33, %v3013_v32  ;;  %v3030_v32 = vld [vmem:[%s4696_s6 + $0x28] sm:$0xff] }
  0x2d   :  { %3642 = vmatprep.subr.bf16.mxu0 %v3950_v3 }
  0x30   :  { %3644 = vmatpush1.bf16.msra.mxu0 %v3643_v37  ;;  %v3665_v37 = vpack.c.bf16 %v3016_v36, %v3015_v35  ;;  %v3032_v35 = vld [vmem:[%s4696_s6 + $0x38] sm:$0xff] }
  0x31   :  { %3694 = vmatprep.subr.bf16.mxu0 %v3693_v2 }
  0x33   :  { %147 = vmatmul.mubr.f32.vlgmr.msra.gmra.mrb[0].mxu0 %v45_v38  ;;  %v3040_v38 = vld [vmem:[%s4697_s7 + $0x3] ss:$0 sm:$0xff] }
  0x34   :  { %2999 = vmatprep.mubr.msk.f32.mxu0 %vm75_vm0, %v48_v39  ;;  %3696 = vmatpush3.bf16.msra.mxu0 %v3693_v2  ;;  %v3003_v39 = vld [vmem:[%s4697_s7] ss:$0 sm:$0xff] }
  0x35   :  { %3698 = vmatprep.subr.bf16.mxu0 %v3697_v9  ;;  %v4259_v2 = vld [vmem:[%s4692_s2] sm:$0xff] }
  0x37   :  { %152 = vmatmul.mubr.f32.gmra.mrb[2].mxu0 %v47_v40 }
  0x38   :  { %3700 = vmatpush3.bf16.msra.mxu0 %v3697_v9 }
 0x106   :  { %v148_v42 = vpop.f32.mrb[0].mxu0 }
 0x107   :  { %v4126_v43 = vadd.f32 %v148_v42, %v73_v41  ;;  %v150_v44 = vpop.f32.mrb[1].mxu0 }
 0x109   :  { %v162_v46 = vsel %vm161_vm1, %v4126_v43, 0.0 }
 0x10a   :  { %v153_v47 = vpop.f32.mrb[2].mxu0  ;;  %163 = vadd.xlane.f32.xlu0 %v162_v46 }
 0x10b   :  { %v4133_v48 = vadd.f32 %v153_v47, %v74_v45  ;;  %v155_v49 = vpop.f32.mrb[3].mxu0 }
 0x10d   :  { %v166_v50 = vsel %vm165_vm2, %v4133_v48, 0.0 }
 0x10e   :  { %167 = vadd.xlane.f32.xlu0 %v166_v50 }
 0x197   :  { %v164_v51 = vpop.xlane.xlu0 %163 }
 0x198   :  { %v170_v52 = vmul.f32 0.03125, %v164_v51  ;;  %v3010_v51 = vld [vmem:[%s4697_s7 + $0x2] ss:$0 sm:$0xff] }
 0x19a   :  { %v172_v53 = vsub.f32 %v4126_v43, %v170_v52 }
 0x19b   :  { %v168_v54 = vpop.xlane.xlu0 %167 }
 0x19c   :  { %v171_v55 = vmul.f32 0.03125, %v168_v54  ;;  %v174_v56 = vmul.f32 %v172_v53, %v172_v53 }
 0x19e   :  { %v173_v57 = vsub.f32 %v4133_v48, %v171_v55  ;;  %v176_v58 = vsel %vm161_vm1, %v174_v56, 0.0 }
 0x19f   :  { %177 = vadd.xlane.f32.xlu1 %v176_v58 }
 0x1a0   :  { %v175_v59 = vmul.f32 %v173_v57, %v173_v57 }
 0x1a2   :  { %v179_v60 = vsel %vm165_vm2, %v175_v59, 0.0 }
 0x1a3   :  { %180 = vadd.xlane.f32.xlu1 %v179_v60 }
 0x22c   :  { %v178_v13 = vpop.xlane.xlu1 %177 }
 0x22d   :  { %v182_v14 = vmul.f32 0.03125, %v178_v13 }
 0x22f   :  { %v184_v15 = vadd.f32 1e-12, %v182_v14 }
 0x230   :  { %v181_v16 = vpop.xlane.xlu1 %180 }
 0x231   :  { %3870 = vrsqrt.f32 %v184_v15  ;;  %v183_v17 = vmul.f32 0.03125, %v181_v16 }
 0x233   :  { %v185_v18 = vadd.f32 1e-12, %v183_v17 }
 0x235   :  { %3872 = vrsqrt.f32 %v185_v18 }
 0x23b   :  { %v3871_v19 = vpop.eup %3870 }
 0x23c   :  { %v188_v21 = vmul.f32 %v3871_v19, %v172_v53 }
 0x23e   :  { %v194_v23 = vmul.f32 %v3000_v20, %v188_v21  ;;  %v666_v21 = vld [vmem:[%s4698_s8 + $0x8] sm:$0xff] }
 0x23f   :  { %v3873_v24 = vpop.eup %3872 }
 0x240   :  { %v4177_v25 = vadd.f32 %v3001_v22, %v194_v23  ;;  %v189_v26 = vmul.f32 %v3873_v24, %v173_v57  ;;  %v3017_v57 = vld [vmem:[%s4697_s7 + $0x4] ss:$0 sm:$0xff] }
 0x242   :  { %v195_v29 = vmul.f32 %v3000_v20, %v189_v26  ;;  %3334 = vmatprep.mubr.msk.f32.mxu1 %vm161_vm1, %v4177_v25  ;;  %3399 = vmatprep.mubr.msk.f32.mxu0 %vm161_vm1, %v4177_v25  ;;  %v665_v20 = vld [vmem:[%s4698_s8] sm:$0xff] }
 0x244   :  { %v4189_v30 = vadd.f32 %v3001_v22, %v195_v29  ;;  %v3681_v22 = vpack.c.bf16 %v666_v21, %v665_v20 }
 0x246   :  { %3335 = vmatmul.mubr.msk.f32.vlgmr.msra.gmra.mrb[0].mxu1 %vm161_vm1, %v4189_v30  ;;  %3400 = vmatmul.mubr.msk.f32.vlgmr.msra.gmra.mrb[4].mxu0 %vm161_vm1, %v4189_v30 }
 0x247   :  { %3656 = vmatpush3.bf16.msra.mxu1 %v3653_v12  ;;  %3345 = vmatprep.mubr.msk.f32.mxu1 %vm161_vm1, %v4177_v25 }
 0x248   :  { %3658 = vmatprep.subr.bf16.mxu1 %v3657_v31 }
 0x24b   :  { %3660 = vmatpush3.bf16.msra.mxu1 %v3657_v31  ;;  %v3029_v31 = vld [vmem:[%s4696_s6 + $0x20] sm:$0xff] }
 0x24c   :  { %3662 = vmatprep.subr.bf16.mxu1 %v3661_v34  ;;  %v3685_v33 = vpack.c.bf16 %v3030_v32, %v3029_v31 }
 0x24e   :  { %3346 = vmatmul.mubr.msk.f32.vlgmr.msra.gmra.mrb[2].mxu1 %vm161_vm1, %v4189_v30 }
 0x24f   :  { %3664 = vmatpush3.bf16.msra.mxu1 %v3661_v34  ;;  %3356 = vmatprep.mubr.msk.f32.mxu1 %vm161_vm1, %v4177_v25  ;;  %v3031_v34 = vld [vmem:[%s4696_s6 + $0x30] sm:$0xff] }
 0x250   :  { %3666 = vmatprep.subr.bf16.mxu1 %v3665_v37 }
 0x253   :  { %3668 = vmatpush3.bf16.msra.mxu1 %v3665_v37 }
 0x256   :  { %3357 = vmatmul.mubr.msk.f32.vlgmr.msra.gmra.mrb[4].mxu1 %vm161_vm1, %v4189_v30 }
 0x319   :  { %v3336_v40 = vpop.f32.mrb[0].mxu1  ;;  %v3401_v41 = vpop.f32.mrb[4].mxu0 }
 0x31a   :  { %v917_v42 = vadd.f32 %v3401_v41, %v3040_v38  ;;  %v289_v44 = vpop.f32.mrb[1].mxu1  ;;  %v911_v45 = vpop.f32.mrb[5].mxu0  ;;  %v295_v63 = vadd.f32 %v3336_v40, %v3003_v39  ;;  %v3044_v40 = vld [vmem:[%s4696_s6 + $0xa8] sm:$0xff] }
 0x31b   :  { %v290_v46 = vadd.f32 %v3003_v39, %v289_v44  ;;  %v912_v47 = vadd.f32 %v3040_v38, %v911_v45  ;;  %v3689_v38 = vpack.c.bf16 %v3032_v35, %v3031_v34  ;;  %v3043_v39 = vld [vmem:[%s4696_s6 + $0xa0] sm:$0xff]  ;;  %v3046_v44 = vld [vmem:[%s4696_s6 + $0xb8] sm:$0xff] }
 0x31c   :  { %v3701_v41 = vpack.c.bf16 %v3044_v40, %v3043_v39 }
 0x31d   :  { %v3709_v50 = vpack.c.bf16 %v917_v42, %v912_v47  ;;  %3363 = vmatprep.mubr.msk.f32.mxu1 %vm468_vm3, %v290_v46  ;;  %v3045_v42 = vld [vmem:[%s4696_s6 + $0xb0] sm:$0xff]  ;;  %v3033_v46 = vld [vmem:[%s4697_s7 + $0x1] ss:$0 sm:$0xff] }
 0x31e   :  { %v3705_v45 = vpack.c.bf16 %v3046_v44, %v3045_v42  ;;  %v1326_v44 = vld [vmem:[%s4700_s10] sm:$0xff] }
 0x31f   :  { %3711 = vmatprep.subr.msk.bf16.mxu0 %vm4223_vm4, %v3709_v50 }
 0x320   :  { %3714 = vmatpush3.bf16.xpose.msk.msra.mxu0 %vm4223_vm4, %v3709_v50 }
 0x321   :  { %v3347_v52 = vpop.f32.mrb[2].mxu1 }
 0x322   :  { %v380_v53 = vadd.f32 %v3347_v52, %v3010_v51  ;;  %v374_v54 = vpop.f32.mrb[3].mxu1 }
 0x323   :  { %v375_v55 = vadd.f32 %v3010_v51, %v374_v54 }
 0x325   :  { %v3669_v56 = vpack.c.bf16 %v380_v53, %v375_v55 }
 0x327   :  { %3671 = vmatprep.subr.msk.bf16.mxu1 %vm4223_vm4, %v3669_v56 }
 0x328   :  { %3674 = vmatpush3.bf16.xpose.msk.msra.mxu1 %vm4223_vm4, %v3669_v56 }
 0x329   :  { %v3358_v58 = vpop.f32.mrb[4].mxu1 }
 0x32a   :  { %v465_v59 = vadd.f32 %v3358_v58, %v3017_v57  ;;  %v459_v60 = vpop.f32.mrb[5].mxu1 }
 0x32b   :  { %v460_v61 = vadd.f32 %v3017_v57, %v459_v60 }
 0x32d   :  { %v3675_v0 = vpack.c.bf16 %v465_v59, %v460_v61 }
 0x32f   :  { %3364 = vmatmul.mubr.msk.f32.vlgmr.msra.gmra.mrb[6].mxu1 %vm468_vm3, %v295_v63  ;;  %3677 = vmatprep.subr.msk.bf16.mxu1 %vm4242_vm7, %v3675_v0 }
 0x330   :  { %3680 = vmatpush3.bf16.msk.msra.mxu1 %vm4242_vm7, %v3675_v0 }
 0x331   :  { %3682 = vmatprep.subr.bf16.mxu1 %v3681_v22 }
 0x402   :  { %v3365_v4 = vpop.f32.mrb[6].mxu1 }
 0x403   :  { %v553_v5 = vadd.f32 %v3365_v4, %v4254_v1  ;;  %v547_v6 = vpop.f32.mrb[7].mxu1 }
 0x404   :  { %v548_v7 = vadd.f32 %v547_v6, %v4259_v2 }
 0x405   :  { %v561_v8 = vsel %vm560_vm8, %v553_v5, -inf }
 0x406   :  { %562 = vmax.xlane.f32.xlu1 %v561_v8  ;;  %v557_v9 = vsel %vm556_vm9, %v548_v7, -inf }
 0x407   :  { %558 = vmax.xlane.f32.xlu0 %v557_v9 }
 0x493   :  { %v563_v10 = vpop.xlane.xlu1 %562 }
 0x494   :  { %v565_v11 = vsub.f32 %v553_v5, %v563_v10  ;;  %v559_v12 = vpop.xlane.xlu0 %558 }
 0x495   :  { %v564_v13 = vsub.f32 %v548_v7, %v559_v12 }
 0x496   :  { %v568_v14 = vmul.f32 1.442695, %v565_v11 }
 0x497   :  { %v566_v15 = vmul.f32 1.442695, %v564_v13  ;;  %v3057_v13 = vld [vmem:[%s4698_s8 + $0x10] sm:$0xff] }
 0x498   :  { %3874 = vpow2.f32 %v568_v14  ;;  %v3058_v14 = vld [vmem:[%s4698_s8 + $0x18] sm:$0xff] }
 0x499   :  { %3876 = vpow2.f32 %v566_v15  ;;  %v3721_v15 = vpack.c.bf16 %v3058_v14, %v3057_v13  ;;  %v1441_v13 = vld [vmem:[%s4702_s12 + $0x28] sm:$0xff] }
 0x4a2   :  { %v3875_v16 = vpop.eup %3874 }
 0x4a3   :  { %v3877_v17 = vpop.eup %3876  ;;  %v573_v18 = vsel %vm560_vm8, %v3875_v16, 0.0 }
 0x4a4   :  { %574 = vadd.xlane.f32.xlu1 %v573_v18  ;;  %v570_v19 = vsel %vm556_vm9, %v3877_v17, 0.0 }
 0x4a5   :  { %571 = vadd.xlane.f32.xlu0 %v570_v19 }
 0x531   :  { %v575_v23 = vpop.xlane.xlu1 %574 }
 0x532   :  { %3878 = vrcp.f32 %v575_v23  ;;  %v572_v24 = vpop.xlane.xlu0 %571 }
 0x533   :  { %3880 = vrcp.f32 %v572_v24  ;;  %v3002_v24 = vld [vmem:[%s4699_s9] ss:$0 sm:$0xff] }
 0x53c   :  { %v3879_v26 = vpop.eup %3878 }
 0x53d   :  { %v3881_v27 = vpop.eup %3880  ;;  %v579_v29 = vmul.f32 %v3879_v26, %v3875_v16 }
 0x53e   :  { %v578_v28 = vmul.f32 %v3881_v27, %v3877_v17 }
 0x540   :  { %3370 = vmatprep.mubr.msk.f32.mxu1 %vm556_vm9, %v578_v28 }
 0x541   :  { %3371 = vmatmul.mubr.msk.f32.vlgmr.msra.gmra.mrb[8].mxu1 %vm556_vm9, %v579_v29 }
 0x542   :  { %3684 = vmatpush3.bf16.msra.mxu1 %v3681_v22 }
 0x543   :  { %3686 = vmatprep.subr.bf16.mxu1 %v3685_v33 }
 0x614   :  { %v3372_v36 = vpop.f32.mrb[8].mxu1 }
 0x615   :  { %v656_v37 = vpop.f32.mrb[9].mxu1 }
 0x616   :  { %3377 = vmatprep.mubr.msk.f32.mxu1 %vm468_vm3, %v656_v37 }
 0x617   :  { %3378 = vmatmul.mubr.msk.f32.vlgmr.msra.gmra.mrb[10].mxu1 %vm468_vm3, %v3372_v36 }
 0x618   :  { %3688 = vmatpush3.bf16.msra.mxu1 %v3685_v33  ;;  %3388 = vmatprep.mubr.msk.f32.mxu1 %vm161_vm1, %v4177_v25 }
 0x619   :  { %3690 = vmatprep.subr.bf16.mxu1 %v3689_v38 }
 0x61c   :  { %3692 = vmatpush3.bf16.msra.mxu1 %v3689_v38 }
 0x61d   :  { %3702 = vmatprep.subr.bf16.mxu1 %v3701_v41 }
 0x61f   :  { %3389 = vmatmul.mubr.msk.f32.vlgmr.msra.gmra.mrb[12].mxu1 %vm161_vm1, %v4189_v30 }
 0x620   :  { %3704 = vmatpush3.bf16.msra.mxu1 %v3701_v41  ;;  %3410 = vmatprep.mubr.msk.f32.mxu1 %vm161_vm1, %v4177_v25  ;;  %v3047_v25 = vld [vmem:[%s4697_s7 + $0x5] ss:$0 sm:$0xff] }
 0x621   :  { %3706 = vmatprep.subr.bf16.mxu1 %v3705_v45 }
 0x624   :  { %3708 = vmatpush3.bf16.msra.mxu1 %v3705_v45  ;;  %v1327_v45 = vld [vmem:[%s4700_s10 + $0x8] sm:$0xff] }
 0x627   :  { %3411 = vmatmul.mubr.msk.f32.vlgmr.msra.gmra.mrb[14].mxu1 %vm161_vm1, %v4189_v30 }
 0x6f2   :  { %v3390_v47 = vpop.f32.mrb[12].mxu1 }
 0x6f3   :  { %v826_v50 = vpop.f32.mrb[13].mxu1  ;;  %v832_v52 = vadd.f32 %v3390_v47, %v3033_v46  ;;  %v1328_v47 = vld [vmem:[%s4700_s10 + $0x10] sm:$0xff] }
 0x6f4   :  { %v827_v51 = vadd.f32 %v3033_v46, %v826_v50  ;;  %v3725_v46 = vpack.c.bf16 %v1327_v45, %v1326_v44  ;;  %v1329_v50 = vld [vmem:[%s4700_s10 + $0x18] sm:$0xff]  ;;  %v3066_v44 = vld [vmem:[%s4699_s9 + $0x1] ss:$0 sm:$0xff] }
 0x6f6   :  { %3417 = vmatprep.mubr.msk.f32.mxu0 %vm468_vm3, %v827_v51  ;;  %3726 = vmatprep.subr.bf16.mxu0 %v3725_v46  ;;  %v3729_v51 = vpack.c.bf16 %v1329_v50, %v1328_v47 }
 0x6f7   :  { %3418 = vmatmul.mubr.msk.f32.vlgmr.msra.gmra.mrb[6].mxu0 %vm468_vm3, %v832_v52 }
 0x6f8   :  { %3728 = vmatpush3.bf16.msra.mxu0 %v3725_v46 }
 0x6f9   :  { %3730 = vmatprep.subr.bf16.mxu0 %v3729_v51 }
 0x6fa   :  { %v3412_v53 = vpop.f32.mrb[14].mxu1 }
 0x6fb   :  { %v1002_v54 = vadd.f32 %v3412_v53, %v3047_v25  ;;  %v996_v55 = vpop.f32.mrb[15].mxu1 }
 0x6fc   :  { %v997_v30 = vadd.f32 %v3047_v25, %v996_v55  ;;  %3732 = vmatpush3.bf16.msra.mxu0 %v3729_v51 }
 0x6fe   :  { %v3715_v56 = vpack.c.bf16 %v1002_v54, %v997_v30 }
 0x700   :  { %3717 = vmatprep.subr.msk.bf16.mxu1 %vm4242_vm7, %v3715_v56 }
 0x701   :  { %3720 = vmatpush3.bf16.msk.msra.mxu1 %vm4242_vm7, %v3715_v56 }
 0x702   :  { %3722 = vmatprep.subr.bf16.mxu1 %v3721_v15 }
 0x7ca   :  { %v3419_v57 = vpop.f32.mrb[6].mxu0 }
 0x7cb   :  { %v1089_v58 = vadd.f32 %v3419_v57, %v4254_v1  ;;  %v1083_v59 = vpop.f32.mrb[7].mxu0  ;;  %v3061_v57 = vld [vmem:[%s4695_s5 + $0x2] ss:$0 sm:$0xff] }
 0x7cc   :  { %v1084_v60 = vadd.f32 %v1083_v59, %v4259_v2 }
 0x7cd   :  { %v1095_v61 = vsel %vm560_vm8, %v1089_v58, -inf }
 0x7ce   :  { %1096 = vmax.xlane.f32.xlu1 %v1095_v61  ;;  %v1092_v63 = vsel %vm556_vm9, %v1084_v60, -inf  ;;  %v3062_v61 = vld [vmem:[%s4695_s5 + $0x3] ss:$0 sm:$0xff] }
 0x7cf   :  { %1093 = vmax.xlane.f32.xlu0 %v1092_v63 }
 0x85b   :  { %v1097_v0 = vpop.xlane.xlu1 %1096 }
 0x85c   :  { %v1099_v4 = vsub.f32 %v1089_v58, %v1097_v0  ;;  %v1094_v5 = vpop.xlane.xlu0 %1093 }
 0x85d   :  { %v1098_v6 = vsub.f32 %v1084_v60, %v1094_v5 }
 0x85e   :  { %v1102_v7 = vmul.f32 1.442695, %v1099_v4 }
 0x85f   :  { %v1100_v8 = vmul.f32 1.442695, %v1098_v6  ;;  %v1436_v6 = vld [vmem:[%s4702_s12] sm:$0xff] }
 0x860   :  { %3882 = vpow2.f32 %v1102_v7  ;;  %v1437_v7 = vld [vmem:[%s4702_s12 + $0x8] sm:$0xff] }
 0x861   :  { %3884 = vpow2.f32 %v1100_v8  ;;  %v3733_v8 = vpack.c.bf16 %v1437_v7, %v1436_v6  ;;  %v3077_v7 = vld [vmem:[%s4696_s6 + $0xd0] sm:$0xff] }
 0x86a   :  { %v3883_v9 = vpop.eup %3882 }
 0x86b   :  { %v3885_v10 = vpop.eup %3884  ;;  %v1107_v11 = vsel %vm560_vm8, %v3883_v9, 0.0 }
 0x86c   :  { %1108 = vadd.xlane.f32.xlu1 %v1107_v11  ;;  %v1104_v12 = vsel %vm556_vm9, %v3885_v10, 0.0 }
 0x86d   :  { %1105 = vadd.xlane.f32.xlu0 %v1104_v12  ;;  %v1440_v12 = vld [vmem:[%s4702_s12 + $0x20] sm:$0xff] }
 0x86e   :  { %v3741_v14 = vpack.c.bf16 %v1441_v13, %v1440_v12  ;;  %v3083_v13 = vld [vmem:[%s4696_s6 + $0x100] sm:$0xff] }
 0x8f9   :  { %v1109_v16 = vpop.xlane.xlu1 %1108 }
 0x8fa   :  { %3886 = vrcp.f32 %v1109_v16  ;;  %v1106_v17 = vpop.xlane.xlu0 %1105  ;;  %v1443_v16 = vld [vmem:[%s4702_s12 + $0x38] sm:$0xff] }
 0x8fb   :  { %3888 = vrcp.f32 %v1106_v17 }
 0x904   :  { %v3887_v18 = vpop.eup %3886 }
 0x905   :  { %v3889_v19 = vpop.eup %3888  ;;  %v1113_v21 = vmul.f32 %v3887_v18, %v3883_v9  ;;  %v1438_v9 = vld [vmem:[%s4702_s12 + $0x10] sm:$0xff]  ;;  %v3063_v18 = vld [vmem:[%s4701_s11] ss:$0 sm:$0xff] }
 0x906   :  { %v1112_v20 = vmul.f32 %v3889_v19, %v3885_v10  ;;  %v1439_v10 = vld [vmem:[%s4702_s12 + $0x18] sm:$0xff] }
 0x907   :  { %v3737_v11 = vpack.c.bf16 %v1439_v10, %v1438_v9  ;;  %v3093_v10 = vld [vmem:[%s4696_s6 + $0x150] sm:$0xff] }
 0x908   :  { %3424 = vmatprep.mubr.msk.f32.mxu1 %vm556_vm9, %v1112_v20 }
 0x909   :  { %3425 = vmatmul.mubr.msk.f32.vlgmr.msra.gmra.mrb[16].mxu1 %vm556_vm9, %v1113_v21 }
 0x90a   :  { %3724 = vmatpush3.bf16.msra.mxu1 %v3721_v15  ;;  %v1442_v15 = vld [vmem:[%s4702_s12 + $0x30] sm:$0xff] }
 0x90b   :  { %3734 = vmatprep.subr.bf16.mxu1 %v3733_v8  ;;  %v3745_v17 = vpack.c.bf16 %v1443_v16, %v1442_v15 }
 0x9dc   :  { %v3426_v22 = vpop.f32.mrb[16].mxu1 }
 0x9dd   :  { %v1189_v23 = vpop.f32.mrb[17].mxu1 }
 0x9de   :  { %3431 = vmatprep.mubr.msk.f32.mxu1 %vm468_vm3, %v1189_v23 }
 0x9df   :  { %3432 = vmatmul.mubr.msk.f32.vlgmr.msra.gmra.mrb[10].mxu1 %vm468_vm3, %v3426_v22 }
 0x9e0   :  { %3736 = vmatpush3.bf16.msra.mxu1 %v3733_v8  ;;  %v3078_v8 = vld [vmem:[%s4696_s6 + $0xd8] sm:$0xff] }
 0x9e1   :  { %3738 = vmatprep.subr.bf16.mxu1 %v3737_v11  ;;  %v3753_v9 = vpack.c.bf16 %v3078_v8, %v3077_v7 }
 0x9e4   :  { %3740 = vmatpush3.bf16.msra.mxu1 %v3737_v11  ;;  %v3094_v11 = vld [vmem:[%s4696_s6 + $0x158] sm:$0xff] }
 0x9e5   :  { %3742 = vmatprep.subr.bf16.mxu1 %v3741_v14  ;;  %v3769_v12 = vpack.c.bf16 %v3094_v11, %v3093_v10 }
 0x9e8   :  { %3744 = vmatpush3.bf16.msra.mxu1 %v3741_v14  ;;  %v3084_v14 = vld [vmem:[%s4696_s6 + $0x108] sm:$0xff] }
 0x9e9   :  { %3746 = vmatprep.subr.bf16.mxu1 %v3745_v17  ;;  %v3757_v15 = vpack.c.bf16 %v3084_v14, %v3083_v13  ;;  %v3115_v13 = vld [vmem:[%s4697_s7 + $0x9] ss:$0 sm:$0xff] }
 0x9ec   :  { %3748 = vmatpush3.bf16.msra.mxu1 %v3745_v17 }
 0xab2   :  { %v3433_v26 = vpop.f32.mrb[10].mxu1 }
 0xab3   :  { %v3857_v27 = vadd.f32 %v3433_v26, %v3002_v24  ;;  %v1273_v28 = vpop.f32.mrb[11].mxu1 }
 0xab4   :  { %v3858_v29 = vadd.f32 %v3002_v24, %v1273_v28 }
 0xab5   :  { %v4341_v31 = vadd.f32 %v3857_v27, %v4133_v48 }
 0xab6   :  { %v4344_v32 = vadd.f32 %v3858_v29, %v4126_v43 }
 0xab7   :  { %v1291_v33 = vsel %vm165_vm2, %v4341_v31, 0.0 }
 0xab8   :  { %1292 = vadd.xlane.f32.xlu1 %v1291_v33  ;;  %v1288_v34 = vsel %vm161_vm1, %v4344_v32, 0.0 }
 0xab9   :  { %1289 = vadd.xlane.f32.xlu0 %v1288_v34 }
 0xb45   :  { %v1293_v35 = vpop.xlane.xlu1 %1292 }
 0xb46   :  { %v1295_v36 = vmul.f32 0.03125, %v1293_v35  ;;  %v1290_v37 = vpop.xlane.xlu0 %1289 }
 0xb47   :  { %v1294_v38 = vmul.f32 0.03125, %v1290_v37 }
 0xb48   :  { %v1297_v39 = vsub.f32 %v4341_v31, %v1295_v36 }
 0xb49   :  { %v1296_v48 = vsub.f32 %v4344_v32, %v1294_v38 }
 0xb4a   :  { %v1299_v40 = vmul.f32 %v1297_v39, %v1297_v39 }
 0xb4b   :  { %v1298_v41 = vmul.f32 %v1296_v48, %v1296_v48 }
 0xb4c   :  { %v1303_v43 = vsel %vm165_vm2, %v1299_v40, 0.0 }
 0xb4d   :  { %1304 = vadd.xlane.f32.xlu1 %v1303_v43  ;;  %v1300_v42 = vsel %vm161_vm1, %v1298_v41, 0.0 }
 0xb4e   :  { %1301 = vadd.xlane.f32.xlu0 %v1300_v42 }
 0xbda   :  { %v1305_v52 = vpop.xlane.xlu1 %1304 }
 0xbdb   :  { %v1307_v25 = vmul.f32 0.03125, %v1305_v52  ;;  %v1302_v53 = vpop.xlane.xlu0 %1301 }
 0xbdc   :  { %v1306_v54 = vmul.f32 0.03125, %v1302_v53 }
 0xbdd   :  { %v1309_v55 = vadd.f32 1e-12, %v1307_v25 }
 0xbde   :  { %v1308_v30 = vadd.f32 1e-12, %v1306_v54 }
 0xbdf   :  { %3890 = vrsqrt.f32 %v1309_v55 }
 0xbe0   :  { %3892 = vrsqrt.f32 %v1308_v30 }
 0xbe9   :  { %v3891_v56 = vpop.eup %3890 }
 0xbea   :  { %v3893_v58 = vpop.eup %3892  ;;  %v1313_v59 = vmul.f32 %v3891_v56, %v1297_v39 }
 0xbeb   :  { %v1312_v60 = vmul.f32 %v3893_v58, %v1296_v48 }
 0xbec   :  { %v1319_v63 = vmul.f32 %v3061_v57, %v1313_v59 }
 0xbed   :  { %v1318_v0 = vmul.f32 %v3061_v57, %v1312_v60 }
 0xbee   :  { %v1325_v5 = vadd.f32 %v3062_v61, %v1319_v63  ;;  %v3076_v63 = vld [vmem:[%s4696_s6 + $0xc8] sm:$0xff] }
 0xbef   :  { %v1324_v4 = vadd.f32 %v3062_v61, %v1318_v0  ;;  %v3075_v61 = vld [vmem:[%s4696_s6 + $0xc0] sm:$0xff] }
 0xbf0   :  { %v3749_v0 = vpack.c.bf16 %v3076_v63, %v3075_v61  ;;  %v3126_v61 = vld [vmem:[%s4696_s6 + $0x160] sm:$0xff]  ;;  %v3127_v63 = vld [vmem:[%s4696_s6 + $0x168] sm:$0xff] }
 0xbf1   :  { %3442 = vmatprep.mubr.msk.f32.mxu0 %vm161_vm1, %v1324_v4  ;;  %v3091_v4 = vld [vmem:[%s4696_s6 + $0x140] sm:$0xff] }
 0xbf2   :  { %3443 = vmatmul.mubr.msk.f32.vlgmr.msra.gmra.mrb[8].mxu0 %vm161_vm1, %v1325_v5  ;;  %v3092_v5 = vld [vmem:[%s4696_s6 + $0x148] sm:$0xff]  ;;  %3750 = vmatprep.subr.bf16.mxu0 %v3749_v0 }
 0xbf3   :  { %v3765_v6 = vpack.c.bf16 %v3092_v5, %v3091_v4  ;;  %3752 = vmatpush3.bf16.msra.mxu0 %v3749_v0  ;;  %v3805_v0 = vpack.c.bf16 %v3127_v63, %v3126_v61  ;;  %v3128_v4 = vld [vmem:[%s4696_s6 + $0x170] sm:$0xff]  ;;  %v3129_v5 = vld [vmem:[%s4696_s6 + $0x178] sm:$0xff] }
 0xbf4   :  { %3754 = vmatprep.subr.bf16.mxu0 %v3753_v9 }
 0xbf5   :  { %3766 = vmatprep.subr.bf16.mxu1 %v3765_v6 }
 0xbf7   :  { %3756 = vmatpush3.bf16.msra.mxu0 %v3753_v9 }
 0xbf8   :  { %3758 = vmatprep.subr.bf16.mxu0 %v3757_v15 }
 0xcc5   :  { %v3444_v19 = vpop.f32.mrb[8].mxu0 }
 0xcc6   :  { %v1415_v20 = vadd.f32 %v3444_v19, %v3063_v18  ;;  %v1409_v21 = vpop.f32.mrb[9].mxu0 }
 0xcc7   :  { %v1410_v22 = vadd.f32 %v3063_v18, %v1409_v21 }
 0xcc8   :  { %v1419_v23 = vmul.f32 %v1415_v20, %v1415_v20 }
 0xcc9   :  { %v1418_v24 = vmul.f32 %v1410_v22, %v1410_v22 }
 0xcca   :  { %v1421_v26 = vmul.f32 %v1419_v23, %v1415_v20  ;;  %v3071_v23 = vld [vmem:[%s4695_s5 + $0x4] ss:$0 sm:$0xff] }
 0xccb   :  { %v1420_v27 = vmul.f32 %v1418_v24, %v1410_v22 }
 0xccc   :  { %v1423_v28 = vmul.f32 0.044715, %v1421_v26 }
 0xccd   :  { %v1422_v29 = vmul.f32 0.044715, %v1420_v27 }
 0xcce   :  { %v1425_v33 = vadd.f32 %v1423_v28, %v1415_v20  ;;  %v3072_v28 = vld [vmem:[%s4695_s5 + $0x5] ss:$0 sm:$0xff] }
 0xccf   :  { %v1424_v34 = vadd.f32 %v1422_v29, %v1410_v22 }
 0xcd0   :  { %v1427_v35 = vmul.f32 0.7978846, %v1425_v33 }
 0xcd1   :  { %v1426_v36 = vmul.f32 0.7978846, %v1424_v34  ;;  %v3085_v34 = vld [vmem:[%s4696_s6 + $0x110] sm:$0xff] }
 0xcd2   :  { %3894 = vtanh.f32 %v1427_v35  ;;  %v3086_v35 = vld [vmem:[%s4696_s6 + $0x118] sm:$0xff] }
 0xcd3   :  { %3896 = vtanh.f32 %v1426_v36 }
 0xcdc   :  { %v3895_v37 = vpop.eup %3894 }
 0xcdd   :  { %v3897_v38 = vpop.eup %3896  ;;  %v1431_v39 = vadd.f32 1.0, %v3895_v37 }
 0xcde   :  { %v1430_v48 = vadd.f32 1.0, %v3897_v38  ;;  %v3761_v38 = vpack.c.bf16 %v3086_v35, %v3085_v34 }
 0xcdf   :  { %v1433_v40 = vmul.f32 0.5, %v1431_v39  ;;  %v3096_v39 = vld [vmem:[%s4697_s7 + $0xc] ss:$0 sm:$0xff] }
 0xce0   :  { %v1432_v41 = vmul.f32 0.5, %v1430_v48  ;;  %v3080_v48 = vld [vmem:[%s4697_s7 + $0x8] ss:$0 sm:$0xff] }
 0xce1   :  { %v1435_v42 = vmul.f32 %v1433_v40, %v1415_v20 }
 0xce2   :  { %v1434_v43 = vmul.f32 %v1432_v41, %v1410_v22 }
 0xce4   :  { %3461 = vmatprep.mubr.msk.f32.mxu1 %vm75_vm0, %v1434_v43 }
 0xce5   :  { %3462 = vmatmul.mubr.msk.f32.vlgmr.msra.gmra.mrb[18].mxu1 %vm75_vm0, %v1435_v42 }
 0xce6   :  { %3768 = vmatpush3.bf16.msra.mxu1 %v3765_v6  ;;  %v3809_v6 = vpack.c.bf16 %v3129_v5, %v3128_v4 }
 0xce7   :  { %3770 = vmatprep.subr.bf16.mxu1 %v3769_v12 }
 0xcea   :  { %3772 = vmatpush3.bf16.msra.mxu1 %v3769_v12 }
 0xdb8   :  { %v3463_v45 = vpop.f32.mrb[18].mxu1 }
 0xdb9   :  { %v1527_v46 = vadd.f32 %v3463_v45, %v3066_v44  ;;  %v1521_v47 = vpop.f32.mrb[19].mxu1 }
 0xdba   :  { %v1522_v50 = vadd.f32 %v3066_v44, %v1521_v47 }
 0xdbb   :  { %v4407_v51 = vadd.f32 %v1527_v46, %v4341_v31 }
 0xdbc   :  { %v4410_v52 = vadd.f32 %v1522_v50, %v4344_v32  ;;  %v3088_v50 = vld [vmem:[%s4697_s7 + $0xa] ss:$0 sm:$0xff] }
 0xdbd   :  { %v1538_v25 = vsel %vm165_vm2, %v4407_v51, 0.0 }
 0xdbe   :  { %1539 = vadd.xlane.f32.xlu1 %v1538_v25  ;;  %v1535_v53 = vsel %vm161_vm1, %v4410_v52, 0.0 }
 0xdbf   :  { %1536 = vadd.xlane.f32.xlu0 %v1535_v53 }
 0xe4b   :  { %v1540_v54 = vpop.xlane.xlu1 %1539 }
 0xe4c   :  { %v1542_v55 = vmul.f32 0.03125, %v1540_v54  ;;  %v1537_v30 = vpop.xlane.xlu0 %1536 }
 0xe4d   :  { %v1541_v56 = vmul.f32 0.03125, %v1537_v30  ;;  %v3111_v30 = vld [vmem:[%s4696_s6 + $0xe8] sm:$0xff] }
 0xe4e   :  { %v1544_v57 = vsub.f32 %v4407_v51, %v1542_v55  ;;  %v3110_v55 = vld [vmem:[%s4696_s6 + $0xe0] sm:$0xff] }
 0xe4f   :  { %v1543_v31 = vsub.f32 %v4410_v52, %v1541_v56 }
 0xe50   :  { %v1546_v58 = vmul.f32 %v1544_v57, %v1544_v57 }
 0xe51   :  { %v1545_v59 = vmul.f32 %v1543_v31, %v1543_v31 }
 0xe52   :  { %v1550_v32 = vsel %vm165_vm2, %v1546_v58, 0.0  ;;  %v3112_v58 = vld [vmem:[%s4696_s6 + $0xf0] sm:$0xff] }
 0xe53   :  { %1551 = vadd.xlane.f32.xlu1 %v1550_v32  ;;  %v1547_v60 = vsel %vm161_vm1, %v1545_v59, 0.0  ;;  %v3113_v59 = vld [vmem:[%s4696_s6 + $0xf8] sm:$0xff] }
 0xe54   :  { %1548 = vadd.xlane.f32.xlu0 %v1547_v60  ;;  %v3793_v60 = vpack.c.bf16 %v3113_v59, %v3112_v58 }
 0xee0   :  { %v1552_v16 = vpop.xlane.xlu1 %1551 }
 0xee1   :  { %v1554_v17 = vmul.f32 0.03125, %v1552_v16  ;;  %v1549_v18 = vpop.xlane.xlu0 %1548 }
 0xee2   :  { %v1553_v19 = vmul.f32 0.03125, %v1549_v18 }
 0xee3   :  { %v1556_v20 = vadd.f32 1e-12, %v1554_v17  ;;  %v3131_v17 = vld [vmem:[%s4697_s7 + $0xd] ss:$0 sm:$0xff] }
 0xee4   :  { %v1555_v21 = vadd.f32 1e-12, %v1553_v19 }
 0xee5   :  { %3898 = vrsqrt.f32 %v1556_v20 }
 0xee6   :  { %3900 = vrsqrt.f32 %v1555_v21 }
 0xeef   :  { %v3899_v22 = vpop.eup %3898 }
 0xef0   :  { %v3901_v24 = vpop.eup %3900  ;;  %v1560_v26 = vmul.f32 %v3899_v22, %v1544_v57 }
 0xef1   :  { %v1559_v27 = vmul.f32 %v3901_v24, %v1543_v31  ;;  %v3789_v31 = vpack.c.bf16 %v3111_v30, %v3110_v55 }
 0xef2   :  { %v1566_v29 = vmul.f32 %v3071_v23, %v1560_v26 }
 0xef3   :  { %v1565_v33 = vmul.f32 %v3071_v23, %v1559_v27 }
 0xef4   :  { %v4464_v37 = vadd.f32 %v3072_v28, %v1566_v29 }
 0xef5   :  { %v4462_v36 = vadd.f32 %v3072_v28, %v1565_v33 }
 0xef7   :  { %3472 = vmatprep.mubr.msk.f32.mxu0 %vm161_vm1, %v4462_v36  ;;  %3494 = vmatprep.mubr.msk.f32.mxu1 %vm161_vm1, %v4462_v36 }
 0xef8   :  { %3473 = vmatmul.mubr.msk.f32.vlgmr.msra.gmra.mrb[10].mxu0 %vm161_vm1, %v4464_v37  ;;  %3495 = vmatmul.mubr.msk.f32.vlgmr.msra.gmra.mrb[20].mxu1 %vm161_vm1, %v4464_v37 }
 0xef9   :  { %3760 = vmatpush3.bf16.msra.mxu0 %v3757_v15  ;;  %3483 = vmatprep.mubr.msk.f32.mxu0 %vm161_vm1, %v4462_v36 }
 0xefa   :  { %3762 = vmatprep.subr.bf16.mxu0 %v3761_v38 }
 0xefd   :  { %3764 = vmatpush3.bf16.msra.mxu0 %v3761_v38 }
 0xf00   :  { %3484 = vmatmul.mubr.msk.f32.vlgmr.msra.gmra.mrb[12].mxu0 %vm161_vm1, %v4464_v37 }
 0xfcb   :  { %v3474_v40 = vpop.f32.mrb[10].mxu0  ;;  %v3496_v41 = vpop.f32.mrb[20].mxu1 }
 0xfcc   :  { %v1839_v43 = vadd.f32 %v3496_v41, %v3096_v39  ;;  %v1663_v42 = vpop.f32.mrb[11].mxu0  ;;  %v1833_v44 = vpop.f32.mrb[21].mxu1  ;;  %v1669_v32 = vadd.f32 %v3474_v40, %v3080_v48 }
 0xfcd   :  { %v1664_v45 = vadd.f32 %v3080_v48, %v1663_v42  ;;  %v1834_v46 = vadd.f32 %v3096_v39, %v1833_v44  ;;  %v3106_v39 = vld [vmem:[%s4698_s8 + $0x20] sm:$0xff]  ;;  %v3107_v48 = vld [vmem:[%s4698_s8 + $0x28] sm:$0xff] }
 0xfce   :  { %v3785_v40 = vpack.c.bf16 %v3107_v48, %v3106_v39 }
 0xfcf   :  { %v3779_v47 = vpack.c.bf16 %v1839_v43, %v1834_v46  ;;  %3501 = vmatprep.mubr.msk.f32.mxu0 %vm468_vm3, %v1664_v45 }
 0xfd1   :  { %3781 = vmatprep.subr.msk.bf16.mxu1 %vm4242_vm7, %v3779_v47 }
 0xfd2   :  { %3784 = vmatpush3.bf16.msk.msra.mxu1 %vm4242_vm7, %v3779_v47  ;;  %v3118_v47 = vld [vmem:[%s4696_s6 + $0x120] sm:$0xff] }
 0xfd3   :  { %v3485_v25 = vpop.f32.mrb[12].mxu0  ;;  %3786 = vmatprep.subr.bf16.mxu1 %v3785_v40 }
 0xfd4   :  { %v1754_v53 = vadd.f32 %v3485_v25, %v3088_v50  ;;  %v1748_v54 = vpop.f32.mrb[13].mxu0 }
 0xfd5   :  { %v1749_v56 = vadd.f32 %v3088_v50, %v1748_v54  ;;  %v3119_v50 = vld [vmem:[%s4696_s6 + $0x128] sm:$0xff]  ;;  %v3121_v54 = vld [vmem:[%s4696_s6 + $0x138] sm:$0xff] }
 0xfd6   :  { %v3797_v25 = vpack.c.bf16 %v3119_v50, %v3118_v47  ;;  %v3150_v47 = vld [vmem:[%s4700_s10 + $0x28] sm:$0xff] }
 0xfd7   :  { %v3773_v57 = vpack.c.bf16 %v1754_v53, %v1749_v56  ;;  %v3120_v53 = vld [vmem:[%s4696_s6 + $0x130] sm:$0xff] }
 0xfd8   :  { %v3801_v56 = vpack.c.bf16 %v3121_v54, %v3120_v53  ;;  %v3152_v53 = vld [vmem:[%s4700_s10 + $0x38] sm:$0xff] }
 0xfd9   :  { %3775 = vmatprep.subr.msk.bf16.mxu0 %vm4223_vm4, %v3773_v57 }
 0xfda   :  { %3778 = vmatpush3.bf16.xpose.msk.msra.mxu0 %vm4223_vm4, %v3773_v57 }
 0xfdb   :  { %3790 = vmatprep.subr.bf16.mxu0 %v3789_v31 }
 0xfe1   :  { %3502 = vmatmul.mubr.msk.f32.vlgmr.msra.gmra.mrb[14].mxu0 %vm468_vm3, %v1669_v32 }
 0xfe2   :  { %3792 = vmatpush3.bf16.msra.mxu0 %v3789_v31  ;;  %3526 = vmatprep.mubr.msk.f32.mxu0 %vm161_vm1, %v4462_v36  ;;  %v3123_v31 = vld [vmem:[%s4697_s7 + $0xb] ss:$0 sm:$0xff] }
 0xfe3   :  { %3794 = vmatprep.subr.bf16.mxu0 %v3793_v60 }
 0xfe6   :  { %3796 = vmatpush3.bf16.msra.mxu0 %v3793_v60 }
 0xfe7   :  { %3806 = vmatprep.subr.bf16.mxu0 %v3805_v0 }
 0xfe9   :  { %3527 = vmatmul.mubr.msk.f32.vlgmr.msra.gmra.mrb[16].mxu0 %vm161_vm1, %v4464_v37 }
 0xfea   :  { %3808 = vmatpush3.bf16.msra.mxu0 %v3805_v0  ;;  %3548 = vmatprep.mubr.msk.f32.mxu0 %vm161_vm1, %v4462_v36 }
 0xfeb   :  { %3810 = vmatprep.subr.bf16.mxu0 %v3809_v6 }
 0xfee   :  { %3812 = vmatpush3.bf16.msra.mxu0 %v3809_v6 }
 0xff1   :  { %3549 = vmatmul.mubr.msk.f32.vlgmr.msra.gmra.mrb[18].mxu0 %vm161_vm1, %v4464_v37 }
0x10b4   :  { %v3503_v7 = vpop.f32.mrb[14].mxu0 }
0x10b5   :  { %v1926_v8 = vadd.f32 %v3503_v7, %v4254_v1  ;;  %v1920_v9 = vpop.f32.mrb[15].mxu0 }
0x10b6   :  { %v1921_v10 = vadd.f32 %v1920_v9, %v4259_v2 }
0x10b7   :  { %v1932_v11 = vsel %vm560_vm8, %v1926_v8, -inf }
0x10b8   :  { %1933 = vmax.xlane.f32.xlu1 %v1932_v11  ;;  %v1929_v12 = vsel %vm556_vm9, %v1921_v10, -inf }
0x10b9   :  { %1930 = vmax.xlane.f32.xlu0 %v1929_v12 }
0x10bc   :  { %v3528_v14 = vpop.f32.mrb[16].mxu0 }
0x10bd   :  { %v4536_v15 = vadd.f32 %v3528_v14, %v3115_v13  ;;  %v2197_v16 = vpop.f32.mrb[17].mxu0  ;;  %v3142_v14 = vld [vmem:[%s4698_s8 + $0x38] sm:$0xff] }
0x10be   :  { %v2198_v57 = vadd.f32 %v3115_v13, %v2197_v16  ;;  %v3141_v13 = vld [vmem:[%s4698_s8 + $0x30] sm:$0xff] }
0x10c4   :  { %v3550_v18 = vpop.f32.mrb[18].mxu0 }
0x10c5   :  { %v2373_v19 = vadd.f32 %v3550_v18, %v3131_v17  ;;  %v2367_v20 = vpop.f32.mrb[19].mxu0 }
0x10c6   :  { %v2368_v21 = vadd.f32 %v3131_v17, %v2367_v20 }
0x10c8   :  { %v3819_v22 = vpack.c.bf16 %v2373_v19, %v2368_v21 }
0x10ca   :  { %3821 = vmatprep.subr.msk.bf16.mxu0 %vm4242_vm7, %v3819_v22 }
0x10cb   :  { %3824 = vmatpush3.bf16.msk.msra.mxu0 %vm4242_vm7, %v3819_v22 }
0x1145   :  { %v1934_v23 = vpop.xlane.xlu1 %1933 }
0x1146   :  { %v1936_v24 = vsub.f32 %v1926_v8, %v1934_v23  ;;  %v1931_v26 = vpop.xlane.xlu0 %1930 }
0x1147   :  { %v1935_v27 = vsub.f32 %v1921_v10, %v1931_v26 }
0x1148   :  { %v1939_v28 = vmul.f32 1.442695, %v1936_v24  ;;  %v3074_v24 = vld [vmem:[%s4699_s9 + $0x2] ss:$0 sm:$0xff] }
0x1149   :  { %v1937_v29 = vmul.f32 1.442695, %v1935_v27 }
0x114a   :  { %3902 = vpow2.f32 %v1939_v28 }
0x114b   :  { %3904 = vpow2.f32 %v1937_v29 }
0x1154   :  { %v3903_v33 = vpop.eup %3902 }
0x1155   :  { %v3905_v34 = vpop.eup %3904  ;;  %v1944_v35 = vsel %vm560_vm8, %v3903_v33, 0.0 }
0x1156   :  { %1945 = vadd.xlane.f32.xlu1 %v1944_v35  ;;  %v1941_v38 = vsel %vm556_vm9, %v3905_v34, 0.0 }
0x1157   :  { %1942 = vadd.xlane.f32.xlu0 %v1941_v38 }
0x11e3   :  { %v1946_v41 = vpop.xlane.xlu1 %1945 }
0x11e4   :  { %3906 = vrcp.f32 %v1946_v41  ;;  %v1943_v43 = vpop.xlane.xlu0 %1942 }
0x11e5   :  { %3908 = vrcp.f32 %v1943_v43 }
0x11ee   :  { %v3907_v42 = vpop.eup %3906 }
0x11ef   :  { %v3909_v44 = vpop.eup %3908  ;;  %v1950_v46 = vmul.f32 %v3907_v42, %v3903_v33 }
0x11f0   :  { %v1949_v45 = vmul.f32 %v3909_v44, %v3905_v34 }
0x11f2   :  { %3508 = vmatprep.mubr.msk.f32.mxu1 %vm556_vm9, %v1949_v45 }
0x11f3   :  { %3509 = vmatmul.mubr.msk.f32.vlgmr.msra.gmra.mrb[22].mxu1 %vm556_vm9, %v1950_v46  ;;  %v3149_v46 = vld [vmem:[%s4700_s10 + $0x20] sm:$0xff] }
0x11f4   :  { %3788 = vmatpush3.bf16.msra.mxu1 %v3785_v40  ;;  %v3829_v50 = vpack.c.bf16 %v3150_v47, %v3149_v46 }
0x11f5   :  { %3798 = vmatprep.subr.bf16.mxu1 %v3797_v25 }
0x11f6   :  { %3830 = vmatprep.subr.bf16.mxu0 %v3829_v50 }
0x12c6   :  { %v3510_v55 = vpop.f32.mrb[22].mxu1 }
0x12c7   :  { %v2026_v30 = vpop.f32.mrb[23].mxu1 }
0x12c8   :  { %3515 = vmatprep.mubr.msk.f32.mxu1 %vm468_vm3, %v2026_v30 }
0x12c9   :  { %3516 = vmatmul.mubr.msk.f32.vlgmr.msra.gmra.mrb[24].mxu1 %vm468_vm3, %v3510_v55 }
0x12ca   :  { %3800 = vmatpush3.bf16.msra.mxu1 %v3797_v25  ;;  %3537 = vmatprep.mubr.msk.f32.mxu1 %vm161_vm1, %v4462_v36  ;;  %v3151_v25 = vld [vmem:[%s4700_s10 + $0x30] sm:$0xff] }
0x12cb   :  { %3802 = vmatprep.subr.bf16.mxu1 %v3801_v56  ;;  %v3833_v54 = vpack.c.bf16 %v3152_v53, %v3151_v25 }
0x12ce   :  { %3804 = vmatpush3.bf16.msra.mxu1 %v3801_v56 }
0x12d1   :  { %3538 = vmatmul.mubr.msk.f32.vlgmr.msra.gmra.mrb[26].mxu1 %vm161_vm1, %v4464_v37 }
0x12d2   :  { %3555 = vmatprep.mubr.msk.f32.mxu1 %vm468_vm3, %v2198_v57 }
0x13a4   :  { %v3539_v58 = vpop.f32.mrb[26].mxu1 }
0x13a5   :  { %v2288_v59 = vadd.f32 %v3539_v58, %v3123_v31  ;;  %v2282_v32 = vpop.f32.mrb[27].mxu1 }
0x13a6   :  { %v2283_v60 = vadd.f32 %v3123_v31, %v2282_v32  ;;  %v3147_v32 = vld [vmem:[%s4695_s5 + $0x6] ss:$0 sm:$0xff] }
0x13a8   :  { %v3813_v61 = vpack.c.bf16 %v2288_v59, %v2283_v60 }
0x13aa   :  { %3815 = vmatprep.subr.msk.bf16.mxu1 %vm4223_vm4, %v3813_v61 }
0x13ab   :  { %3818 = vmatpush3.bf16.xpose.msk.msra.mxu1 %vm4223_vm4, %v3813_v61 }
0x13b2   :  { %3556 = vmatmul.mubr.msk.f32.vlgmr.msra.gmra.mrb[28].mxu1 %vm468_vm3, %v4536_v15  ;;  %v3825_v15 = vpack.c.bf16 %v3142_v14, %v3141_v13  ;;  %v3154_v14 = vld [vmem:[%s4701_s11 + $0x1] ss:$0 sm:$0xff] }
0x13b4   :  { %3826 = vmatprep.subr.bf16.mxu1 %v3825_v15 }
0x13b5   :  { %3828 = vmatpush3.bf16.msra.mxu1 %v3825_v15 }
0x1485   :  { %v3557_v36 = vpop.f32.mrb[28].mxu1 }
0x1486   :  { %v2460_v37 = vadd.f32 %v3557_v36, %v4254_v1  ;;  %v2454_v63 = vpop.f32.mrb[29].mxu1 }
0x1487   :  { %v2455_v0 = vadd.f32 %v2454_v63, %v4259_v2 }
0x1488   :  { %v2466_v4 = vsel %vm560_vm8, %v2460_v37, -inf }
0x1489   :  { %2467 = vmax.xlane.f32.xlu1 %v2466_v4  ;;  %v2463_v5 = vsel %vm556_vm9, %v2455_v0, -inf }
0x148a   :  { %2464 = vmax.xlane.f32.xlu0 %v2463_v5  ;;  %v3157_v5 = vld [vmem:[%s4702_s12 + $0x40] sm:$0xff] }
0x1516   :  { %v2468_v6 = vpop.xlane.xlu1 %2467 }
0x1517   :  { %v2470_v7 = vsub.f32 %v2460_v37, %v2468_v6  ;;  %v2465_v8 = vpop.xlane.xlu0 %2464  ;;  %v3158_v6 = vld [vmem:[%s4702_s12 + $0x48] sm:$0xff] }
0x1518   :  { %v2469_v49 = vsub.f32 %v2455_v0, %v2465_v8  ;;  %v3159_v8 = vld [vmem:[%s4702_s12 + $0x50] sm:$0xff] }
0x1519   :  { %v2473_v9 = vmul.f32 1.442695, %v2470_v7  ;;  %v3837_v7 = vpack.c.bf16 %v3158_v6, %v3157_v5 }
0x151a   :  { %v2471_v10 = vmul.f32 1.442695, %v2469_v49  ;;  %v3160_v49 = vld [vmem:[%s4702_s12 + $0x58] sm:$0xff] }
0x151b   :  { %3910 = vpow2.f32 %v2473_v9  ;;  %3838 = vmatprep.subr.bf16.mxu1 %v3837_v7  ;;  %v3841_v9 = vpack.c.bf16 %v3160_v49, %v3159_v8 }
0x151c   :  { %3912 = vpow2.f32 %v2471_v10  ;;  %v3161_v10 = vld [vmem:[%s4702_s12 + $0x60] sm:$0xff] }
0x1525   :  { %v3911_v11 = vpop.eup %3910 }
0x1526   :  { %v3913_v12 = vpop.eup %3912  ;;  %v2478_v1 = vsel %vm560_vm8, %v3911_v11, 0.0 }
0x1527   :  { %2479 = vadd.xlane.f32.xlu1 %v2478_v1  ;;  %v2475_v2 = vsel %vm556_vm9, %v3913_v12, 0.0  ;;  %v3163_v1 = vld [vmem:[%s4702_s12 + $0x70] sm:$0xff] }
0x1528   :  { %2476 = vadd.xlane.f32.xlu0 %v2475_v2  ;;  %v3164_v2 = vld [vmem:[%s4702_s12 + $0x78] sm:$0xff] }
0x1529   :  { %v3849_v13 = vpack.c.bf16 %v3164_v2, %v3163_v1 }
0x15b4   :  { %v2480_v16 = vpop.xlane.xlu1 %2479 }
0x15b5   :  { %3914 = vrcp.f32 %v2480_v16  ;;  %v2477_v17 = vpop.xlane.xlu0 %2476 }
0x15b6   :  { %3916 = vrcp.f32 %v2477_v17 }
0x15bf   :  { %v3915_v18 = vpop.eup %3914 }
0x15c0   :  { %v3917_v19 = vpop.eup %3916  ;;  %v2484_v21 = vmul.f32 %v3915_v18, %v3911_v11  ;;  %v3162_v11 = vld [vmem:[%s4702_s12 + $0x68] sm:$0xff] }
0x15c1   :  { %v2483_v20 = vmul.f32 %v3917_v19, %v3913_v12  ;;  %v3845_v12 = vpack.c.bf16 %v3162_v11, %v3161_v10 }
0x15c3   :  { %3562 = vmatprep.mubr.msk.f32.mxu0 %vm556_vm9, %v2483_v20 }
0x15c4   :  { %3563 = vmatmul.mubr.msk.f32.vlgmr.msra.gmra.mrb[20].mxu0 %vm556_vm9, %v2484_v21 }
0x15c5   :  { %3832 = vmatpush3.bf16.msra.mxu0 %v3829_v50 }
0x15c6   :  { %3834 = vmatprep.subr.bf16.mxu0 %v3833_v54 }
0x15c9   :  { %3836 = vmatpush3.bf16.msra.mxu0 %v3833_v54  ;;  %v2906_v54 = vld [vmem:[%s4693_s3] sm:$0x3] }
0x15ca   :  { %3853 = vmatprep.subr.bf16.mxu0 %v3950_v3  ;;  %v3148_v3 = vld [vmem:[%s4695_s5 + $0x7] ss:$0 sm:$0xff] }
0x1697   :  { %v3564_v22 = vpop.f32.mrb[20].mxu0 }
0x1698   :  { %v2560_v23 = vpop.f32.mrb[21].mxu0 }
0x1699   :  { %3569 = vmatprep.mubr.msk.f32.mxu1 %vm468_vm3, %v2560_v23 }
0x169a   :  { %3570 = vmatmul.mubr.msk.f32.vlgmr.msra.gmra.mrb[24].mxu1 %vm468_vm3, %v3564_v22 }
0x169b   :  { %3840 = vmatpush3.bf16.msra.mxu1 %v3837_v7 }
0x169c   :  { %3842 = vmatprep.subr.bf16.mxu1 %v3841_v9 }
0x169f   :  { %3844 = vmatpush3.bf16.msra.mxu1 %v3841_v9 }
0x16a0   :  { %3846 = vmatprep.subr.bf16.mxu1 %v3845_v12 }
0x16a3   :  { %3848 = vmatpush3.bf16.msra.mxu1 %v3845_v12 }
0x16a4   :  { %3850 = vmatprep.subr.bf16.mxu1 %v3849_v13 }
0x16a7   :  { %3852 = vmatpush3.bf16.msra.mxu1 %v3849_v13 }
0x176d   :  { %v3571_v26 = vpop.f32.mrb[24].mxu1 }
0x176e   :  { %v3859_v27 = vadd.f32 %v3571_v26, %v3074_v24  ;;  %v2644_v28 = vpop.f32.mrb[25].mxu1 }
0x176f   :  { %v3860_v29 = vadd.f32 %v3074_v24, %v2644_v28 }
0x1770   :  { %v4603_v33 = vadd.f32 %v3859_v27, %v4407_v51 }
0x1771   :  { %v4606_v34 = vadd.f32 %v3860_v29, %v4410_v52 }
0x1772   :  { %v2662_v35 = vsel %vm165_vm2, %v4603_v33, 0.0 }
0x1773   :  { %2663 = vadd.xlane.f32.xlu1 %v2662_v35  ;;  %v2659_v38 = vsel %vm161_vm1, %v4606_v34, 0.0 }
0x1774   :  { %2660 = vadd.xlane.f32.xlu0 %v2659_v38 }
0x1800   :  { %v2664_v39 = vpop.xlane.xlu1 %2663 }
0x1801   :  { %v2666_v48 = vmul.f32 0.03125, %v2664_v39  ;;  %v2661_v40 = vpop.xlane.xlu0 %2660 }
0x1802   :  { %v2665_v41 = vmul.f32 0.03125, %v2661_v40 }
0x1803   :  { %v2668_v43 = vsub.f32 %v4603_v33, %v2666_v48 }
0x1804   :  { %v2667_v51 = vsub.f32 %v4606_v34, %v2665_v41 }
0x1805   :  { %v2670_v42 = vmul.f32 %v2668_v43, %v2668_v43 }
0x1806   :  { %v2669_v44 = vmul.f32 %v2667_v51, %v2667_v51 }
0x1807   :  { %v2674_v52 = vsel %vm165_vm2, %v2670_v42, 0.0  ;;  %v3953_v42 = vmov 0.0  }
0x1808   :  { %2675 = vadd.xlane.f32.xlu1 %v2674_v52  ;;  %v2671_v45 = vsel %vm161_vm1, %v2669_v44, 0.0  ;;  %v3166_v44 = vld [vmem:[%s4699_s9 + $0x3] ss:$0 sm:$0xff]  ;;  %s2990_s9 = sshll.u32 %s3954_s0, 4  ;;  %s2991_s9 = int_to_ptr.vmem [resolvable:$true] %s2990_s9 }
0x1809   :  { %2672 = vadd.xlane.f32.xlu0 %v2671_v45  ;;  %s3926_s1 = scalar_lea.vmem %s2991_s9, 32  ;;  %p3931_p1 = scmp.lt.s32.totalorder %s2991_s9, %s2991_s9 }
0x180a   :  { %p3927_p0 = scmp.ne.s32.totalorder %s2991_s9, %s3926_s1  ;;  %p3932_p2 = scmp.lt.s32.totalorder %s3926_s1, %s3926_s1 }
0x180c   :  { %p3933_p3 = por %p3932_p2, %p3931_p1 }
0x180e   :  { %p3934_p4 = pnand %p3933_p3, %p3927_p0 }
0x1895   :  { %v2676_v55 = vpop.xlane.xlu1 %2675 }
0x1896   :  { %v2678_v30 = vmul.f32 0.03125, %v2676_v55  ;;  %v2673_v56 = vpop.xlane.xlu0 %2672 }
0x1897   :  { %v2677_v57 = vmul.f32 0.03125, %v2673_v56 }
0x1898   :  { %v2680_v31 = vadd.f32 1e-12, %v2678_v30 }
0x1899   :  { %v2679_v58 = vadd.f32 1e-12, %v2677_v57 }
0x189a   :  { %3918 = vrsqrt.f32 %v2680_v31 }
0x189b   :  { %3920 = vrsqrt.f32 %v2679_v58 }
0x18a4   :  { %v3919_v59 = vpop.eup %3918 }
0x18a5   :  { %v3921_v60 = vpop.eup %3920  ;;  %v2684_v61 = vmul.f32 %v3919_v59, %v2668_v43 }
0x18a6   :  { %v2683_v36 = vmul.f32 %v3921_v60, %v2667_v51 }
0x18a7   :  { %v2690_v37 = vmul.f32 %v3147_v32, %v2684_v61 }
0x18a8   :  { %v2689_v63 = vmul.f32 %v3147_v32, %v2683_v36 }
0x18a9   :  { %v2696_v4 = vadd.f32 %v3148_v3, %v2690_v37 }
0x18aa   :  { %v2695_v0 = vadd.f32 %v3148_v3, %v2689_v63 }
0x18ac   :  { %3580 = vmatprep.mubr.msk.f32.mxu0 %vm161_vm1, %v2695_v0 }
0x18ad   :  { %3581 = vmatmul.mubr.msk.f32.vlgmr.msra.gmra.mrb[22].mxu0 %vm161_vm1, %v2696_v4 }
0x18ae   :  { %3606 = vmatprep.mubr.msk.f32.mxu0 %vm3952_vm10, %v3953_v42 }
0x1980   :  { %v3582_v15 = vpop.f32.mrb[22].mxu0 }
0x1981   :  { %v2788_v16 = vadd.f32 %v3582_v15, %v3154_v14  ;;  %v2782_v17 = vpop.f32.mrb[23].mxu0 }
0x1982   :  { %v2783_v18 = vadd.f32 %v3154_v14, %v2782_v17 }
0x1983   :  { %v2792_v19 = vmul.f32 %v2788_v16, %v2788_v16 }
0x1984   :  { %v2791_v20 = vmul.f32 %v2783_v18, %v2783_v18 }
0x1985   :  { %v2794_v21 = vmul.f32 %v2792_v19, %v2788_v16 }
0x1986   :  { %v2793_v22 = vmul.f32 %v2791_v20, %v2783_v18 }
0x1987   :  { %v2796_v23 = vmul.f32 0.044715, %v2794_v21 }
0x1988   :  { %v2795_v24 = vmul.f32 0.044715, %v2793_v22 }
0x1989   :  { %v2798_v26 = vadd.f32 %v2796_v23, %v2788_v16 }
0x198a   :  { %v2797_v27 = vadd.f32 %v2795_v24, %v2783_v18 }
0x198b   :  { %v2800_v28 = vmul.f32 0.7978846, %v2798_v26 }
0x198c   :  { %v2799_v29 = vmul.f32 0.7978846, %v2797_v27 }
0x198d   :  { %3922 = vtanh.f32 %v2800_v28 }
0x198e   :  { %3924 = vtanh.f32 %v2799_v29 }
0x1997   :  { %v3923_v35 = vpop.eup %3922 }
0x1998   :  { %v3925_v38 = vpop.eup %3924  ;;  %v2804_v39 = vadd.f32 1.0, %v3923_v35 }
0x1999   :  { %v2803_v48 = vadd.f32 1.0, %v3925_v38 }
0x199a   :  { %v2806_v40 = vmul.f32 0.5, %v2804_v39 }
0x199b   :  { %v2805_v41 = vmul.f32 0.5, %v2803_v48 }
0x199c   :  { %v2808_v51 = vmul.f32 %v2806_v40, %v2788_v16 }
0x199d   :  { %v2807_v43 = vmul.f32 %v2805_v41, %v2783_v18 }
0x199f   :  { %3599 = vmatprep.mubr.msk.f32.mxu1 %vm75_vm0, %v2807_v43 }
0x19a0   :  { %3600 = vmatmul.mubr.msk.f32.vlgmr.msra.gmra.mrb[30].mxu1 %vm75_vm0, %v2808_v51 }
0x1a73   :  { %v3601_v52 = vpop.f32.mrb[30].mxu1 }
0x1a74   :  { %v2901_v45 = vadd.f32 %v3601_v52, %v3166_v44  ;;  %v2895_v46 = vpop.f32.mrb[31].mxu1 }
0x1a75   :  { %v2896_v47 = vadd.f32 %v3166_v44, %v2895_v46 }
0x1a76   :  { %v2905_v50 = vadd.f32 %v2901_v45, %v4603_v33 }
0x1a77   :  { %v2904_v25 = vadd.f32 %v2896_v47, %v4606_v34 }
0x1a79   :  { %v3854_v53 = vpack.c.bf16 %v2905_v50, %v2904_v25 }
0x1a7b   :  { %3856 = vmatpush3.bf16.msk.msra.mxu0 %vm4242_vm7, %v3854_v53 }
0x1a7e   :  { %3607 = vmatmul.mubr.msk.f32.vlgmr.msra.gmra.mrb[24].mxu0 %vm556_vm9, %v2906_v54 }
0x1b51   :  { %v2979_v55 = vpop.f32.mrb[24].mxu0 }
0x1b52   :  { %2983 = vst.msk [vmem:[#allocation2] sm:$0x3] %vm165_vm2, %v2979_v55  ;;  %v3608_v30 = vpop.f32.mrb[25].mxu0 }
0x1b53   :  { %3937 = shalt.err (!%p3934_p4)
}
0x1b54   :  { %s3938_s3 = scalar_lea.hbm %s4703_s13, 32 }
0x1b55   :  { %p3939_p5 = scmp.ne.s32.totalorder %s4703_s13, %s3938_s3  ;;  %p3942_p6 = scmp.lt.u32.totalorder %s3938_s3, %s4703_s13 }
0x1b57   :  { %p3944_p7 = pnand %p3942_p6, %p3939_p5 }
0x1b59   :  { %3947 = shalt.err (!%p3944_p7)
}
0x1b5a   :  { %2993 = dma.vmem_to_hbm [thread:$0]  %s2991_s9, 32, %s4703_s13, [#allocation3]  }
0x1b5b   :  { %3948 = dma.done.wait [#allocation3], 32  }
0x1b5c   :  { %3949 = vsyncadd [#allocation3], 4294967264 }
0x1b5d   :  { %2997 = vsyncpa [#allocation3], 1 }

</bundles_post_ra>
